<compile_context>
chip_gen: v5e
topology: v5e:2x2
jax: 0.10.0
libtpu: 0.0.40
codegen_flags: <defaults>
</compile_context>

<pallas_src>
import functools

import jax
import jax.numpy as jnp
import numpy as np
from jax import lax
from jax.experimental import pallas as pl
from jax.experimental.pallas import tpu as pltpu

H = W = 16
HW = H * W
_MAX_BLOCK_N = 32          # samples batched per grid step (review: 32-128)

# Tap k = kh*3 + kw, spatial offset (dh, dw) = (kh-1, kw-1),
# flattened lane offset d = dh*W + dw.
_TAP_OFFSETS = tuple((kh - 1) * W + (kw - 1) for kh in range(3) for kw in range(3))


def _round_up(v, m):
    return (v + m - 1) // m * m


def _tap_masks() -> np.ndarray:
    """(9, 256) 0/1 masks: mask[k, h*W + w] = 1 iff (h+dh, w+dw) is in-bounds."""
    m = np.zeros((9, HW), np.float32)
    for kh in range(3):
        for kw in range(3):
            dh, dw = kh - 1, kw - 1
            k = kh * 3 + kw
            for h in range(H):
                for w in range(W):
                    if 0 <= h + dh < H and 0 <= w + dw < W:
                        m[k, h * W + w] = 1.0
    return m


_TAP_MASKS = _tap_masks()


# ------------------------------- kernel ---------------------------------------

def _make_resblock_kernel(cout, block_n, has_shortcut, mxu_dtype):
    L = block_n * HW
    inv_n = 1.0 / float(cout * HW)      # true (unpadded) LayerNorm element count
    eps = 1e-5

    def im2col(xv, mask):
        """(c, L) activation -> (9*c, L) im2col slab via XLU rolls + tap masks."""
        taps = []
        for k, d in enumerate(_TAP_OFFSETS):
            if d == 0:
                taps.append(xv)                       # centre tap: mask is all ones
            else:
                # out[p] = xv[p + d]; wrap across sample boundaries is zeroed by
                # the tiled mask, so lane-batched samples never leak into each
                # other.
                shifted = pltpu.roll(xv, shift=(-d) % L, axis=1)
                taps.append(shifted * mask[k:k + 1, :])
        # 8-row (sublane-aligned) chunks -> cheap concat; cast once for the MXU.
        return jnp.concatenate(taps, axis=0).astype(mxu_dtype)

    def layer_norm(y, gamma, beta, relu):
        """Per-sample LayerNorm over (C, H, W); fused single-sweep statistics.

        Padded channel rows are exactly zero (zero conv weights & bias), so they
        contribute nothing to the sums; gamma/beta are zero there so they stay 0.
        Sample slices are 256-lane aligned (2 f32 vregs wide) -> free slicing.
        """
        outs = []
        for s in range(block_n):
            ys = y[:, s * HW:(s + 1) * HW]
            s1 = jnp.sum(jnp.sum(ys, axis=1, keepdims=True), axis=0, keepdims=True)
            s2 = jnp.sum(jnp.sum(ys * ys, axis=1, keepdims=True), axis=0, keepdims=True)
            mu = s1 * inv_n
            var = s2 * inv_n - mu * mu
            o = (ys - mu) * lax.rsqrt(var + eps) * gamma + beta
            if relu:
                o = jnp.maximum(o, 0.0)
            outs.append(o)
        return outs[0] if block_n == 1 else jnp.concatenate(outs, axis=1)

    def kernel(*refs):
        if has_shortcut:
            (x_ref, m_ref,
             w1_ref, b1_ref, g1_ref, be1_ref,
             w2_ref, b2_ref, g2_ref, be2_ref,
             ws_ref, bs_ref, gs_ref, bes_ref,
             o_ref) = refs
        else:
            (x_ref, m_ref,
             w1_ref, b1_ref, g1_ref, be1_ref,
             w2_ref, b2_ref, g2_ref, be2_ref,
             o_ref) = refs

        x = x_ref[...]                       # (cpad_in, B*HW) f32
        mask = m_ref[...]                    # (9, B*HW) f32

        # ---- conv1 (3x3, pad 1): one wide K = 9*cpad_in matmul -----------------
        y = jnp.dot(w1_ref[...], im2col(x, mask),
                    preferred_element_type=jnp.float32) + b1_ref[...]
        y = layer_norm(y, g1_ref[...], be1_ref[...], relu=True)

        # ---- conv2 (3x3, pad 1): one wide K = 9*cpad_out matmul ----------------
        y = jnp.dot(w2_ref[...], im2col(y, mask),
                    preferred_element_type=jnp.float32) + b2_ref[...]
        y = layer_norm(y, g2_ref[...], be2_ref[...], relu=False)

        # ---- shortcut ----------------------------------------------------------
        if has_shortcut:                     # 1x1 conv + LayerNorm
            s = jnp.dot(ws_ref[...], x.astype(mxu_dtype),
                        preferred_element_type=jnp.float32) + bs_ref[...]
            s = layer_norm(s, gs_ref[...], bes_ref[...], relu=False)
        else:                                # identity (cin == cout, stride == 1)
            s = x

        o_ref[...] = jnp.maximum(y + s, 0.0).astype(o_ref.dtype)

    return kernel


# ------------------------------- wrapper ---------------------------------------

def _prep_conv3x3(w, cin_pad, cout_pad, dtype):
    o, ci = w.shape[0], w.shape[1]
    wt = jnp.transpose(w, (0, 2, 3, 1)).reshape(o, 9, ci)      # [o, k, c]
    wt = jnp.pad(wt, ((0, cout_pad - o), (0, 0), (0, cin_pad - ci)))
    return wt.reshape(cout_pad, 9 * cin_pad).astype(dtype)


def _prep_conv1x1(w, cin_pad, cout_pad, dtype):
    o, ci = w.shape[0], w.shape[1]
    wt = jnp.pad(w.reshape(o, ci), ((0, cout_pad - o), (0, cin_pad - ci)))
    return wt.astype(dtype)


def _pad_rows(a, rows):
    return jnp.pad(a, ((0, rows - a.shape[0]), (0, 0)))


@functools.partial(jax.jit, static_argnames=("block_n", "mxu_dtype"))
def residual_block_forward(x, params, *, block_n=None, mxu_dtype=jnp.bfloat16):
    """x: (N, Cin, 16, 16) float32. Returns (N, Cout, 16, 16); stride == 1."""
    n, cin = x.shape[0], x.shape[1]
    assert x.shape[2] == H and x.shape[3] == W
    cout = params["w1"].shape[0]
    has_shortcut = "ws" in params                 # projection shortcut present
    if not has_shortcut:
        assert cin == cout

    cpi = _round_up(cin, 8)                       # 8-sublane aligned tap chunks
    cpo = _round_up(cout, 8)

    # Samples per grid step: amortize per-step overhead, but keep >= 2 grid
    # steps so both v7x TensorCores have work; cap the in-kernel im2col slab.
    if block_n is None:
        block_n = max(1, min(_MAX_BLOCK_N, n // 2)) if n > 1 else 1
    slab_bytes = 9 * max(cpi, cpo) * HW * 4
    block_n = max(1, min(block_n, (4 << 20) // slab_bytes))
    n_pad = _round_up(n, block_n)
    grid_n = n_pad // block_n
    L = block_n * HW

    # Lane-dense layout: activations (Cpad, N_pad*HW) with samples concatenated
    # on the lane axis; padded samples / channels are zero and sliced off below.
    xp = jnp.pad(x, ((0, n_pad - n), (0, cpi - cin), (0, 0), (0, 0)))
    x_flat = jnp.transpose(xp, (1, 0, 2, 3)).reshape(cpi, n_pad * HW)

    mask = jnp.tile(jnp.asarray(_TAP_MASKS), (1, block_n))     # (9, B*HW)

    args = [
        x_flat, mask,
        _prep_conv3x3(params["w1"], cpi, cpo, mxu_dtype),
        _pad_rows(params["b1"].reshape(cout, 1), cpo),
        _pad_rows(params["g1"].reshape(cout, HW), cpo),
        _pad_rows(params["be1"].reshape(cout, HW), cpo),
        _prep_conv3x3(params["w2"], cpo, cpo, mxu_dtype),
        _pad_rows(params["b2"].reshape(cout, 1), cpo),
        _pad_rows(params["g2"].reshape(cout, HW), cpo),
        _pad_rows(params["be2"].reshape(cout, HW), cpo),
    ]
    if has_shortcut:
        args += [
            _prep_conv1x1(params["ws"], cpi, cpo, mxu_dtype),
            _pad_rows(params["bs"].reshape(cout, 1), cpo),
            _pad_rows(params["gs"].reshape(cout, HW), cpo),
            _pad_rows(params["bes"].reshape(cout, HW), cpo),
        ]

    def const_spec(a):
        return pl.BlockSpec(a.shape, lambda b, _nd=a.ndim: (0,) * _nd)

    in_specs = [pl.BlockSpec((cpi, L), lambda b: (0, b))]
    in_specs += [const_spec(a) for a in args[1:]]

    out = pl.pallas_call(
        _make_resblock_kernel(cout, block_n, has_shortcut, mxu_dtype),
        out_shape=jax.ShapeDtypeStruct((cpo, n_pad * HW), x.dtype),
        grid=(grid_n,),
        in_specs=in_specs,
        out_specs=pl.BlockSpec((cpo, L), lambda b: (0, b)),
        compiler_params=pltpu.CompilerParams(
            dimension_semantics=("parallel",)),
    )(*args)

    out = out.reshape(cpo, n_pad, H, W)
    return jnp.transpose(out, (1, 0, 2, 3))[:n, :cout]


# ------------------------------ reference --------------------------------------

def _reference_forward(x, params):
    """Pure-JAX (lax.conv) reference for correctness checking."""
    def conv(v, w, b, pad):
        y = lax.conv_general_dilated(
            v, w, window_strides=(1, 1), padding=((pad, pad), (pad, pad)),
            dimension_numbers=("NCHW", "OIHW", "NCHW"))
        return y + b.reshape(1, -1, 1, 1)

    def ln(v, g, b, eps=1e-5):
        mu = jnp.mean(v, axis=(1, 2, 3), keepdims=True)
        var = jnp.mean(jnp.square(v - mu), axis=(1, 2, 3), keepdims=True)
        return (v - mu) * lax.rsqrt(var + eps) * g[None] + b[None]

    y = jnp.maximum(ln(conv(x, params["w1"], params["b1"], 1),
                       params["g1"], params["be1"]), 0.0)
    y = ln(conv(y, params["w2"], params["b2"], 1), params["g2"], params["be2"])
    if "ws" in params:
        s = ln(conv(x, params["ws"], params["bs"], 0),
               params["gs"], params["bes"])
    else:
        s = x
    return jnp.maximum(y + s, 0.0)


if __name__ == "__main__":
    key = jax.random.PRNGKey(0)
    k = jax.random.split(key, 7)

    # ResidualBlock(filters_in=4, filters=8, height=16, stride=1)
    # N = 4 so each grid step batches 2 samples on the lane axis (locks in the
    # roll-across-sample-boundary masking) and the grid still has 2 steps.
    N, CIN, COUT = 4, 4, 8
    x = jax.random.normal(k[0], (N, CIN, H, W), dtype=jnp.float32)

    def conv_init(key_, shape):
        fan_in = shape[1] * shape[2] * shape[3]
        bound = 1.0 / np.sqrt(fan_in)
        kw_, kb_ = jax.random.split(key_)
        return (jax.random.uniform(kw_, shape, jnp.float32, -bound, bound),
                jax.random.uniform(kb_, (shape[0],), jnp.float32, -bound, bound))

    def ln_init(key_):
        kg, kb_ = jax.random.split(key_)
        return (1.0 + 0.1 * jax.random.normal(kg, (COUT, H, W), jnp.float32),
                0.1 * jax.random.normal(kb_, (COUT, H, W), jnp.float32))

    w1, b1 = conv_init(k[1], (COUT, CIN, 3, 3))
    w2, b2 = conv_init(k[2], (COUT, COUT, 3, 3))
    ws, bs = conv_init(k[3], (COUT, CIN, 1, 1))
    g1, be1 = ln_init(k[4])
    g2, be2 = ln_init(k[5])
    gs, bes = ln_init(k[6])

    params = dict(w1=w1, b1=b1, g1=g1, be1=be1,
                  w2=w2, b2=b2, g2=g2, be2=be2,
                  ws=ws, bs=bs, gs=gs, bes=bes)

    ref = jax.block_until_ready(_reference_forward(x, params))

    # Exact-path check (f32 MXU operands, v5e-style).
    out_f32 = jax.block_until_ready(
        residual_block_forward(x, params, mxu_dtype=jnp.float32))
    assert out_f32.shape == (N, COUT, H, W)
    np.testing.assert_allclose(np.asarray(out_f32), np.asarray(ref),
                               rtol=1e-4, atol=2e-4)

    # bf16 MXU-operand path (v6e/v7x guidance); f32 accumulation & elementwise,
    # so only a small (~1e-2) absolute deviation from the f32 reference.
    out_bf16 = jax.block_until_ready(
        residual_block_forward(x, params, mxu_dtype=jnp.bfloat16))
    assert out_bf16.shape == (N, COUT, H, W)
    np.testing.assert_allclose(np.asarray(out_bf16), np.asarray(ref),
                               rtol=1e-1, atol=1e-1)

    print("KERNEL_OK")
</pallas_src>

<mosaic_0001>
module attributes {stable_mosaic.version = 11 : i64} {
  func.func @kernel(%arg0: i32, %arg1: memref<8x512xf32, #tpu.memory_space<vmem>>, %arg2: memref<9x512xf32, #tpu.memory_space<vmem>>, %arg3: memref<8x72xf32, #tpu.memory_space<vmem>>, %arg4: memref<8x1xf32, #tpu.memory_space<vmem>>, %arg5: memref<8x256xf32, #tpu.memory_space<vmem>>, %arg6: memref<8x256xf32, #tpu.memory_space<vmem>>, %arg7: memref<8x72xf32, #tpu.memory_space<vmem>>, %arg8: memref<8x1xf32, #tpu.memory_space<vmem>>, %arg9: memref<8x256xf32, #tpu.memory_space<vmem>>, %arg10: memref<8x256xf32, #tpu.memory_space<vmem>>, %arg11: memref<8x8xf32, #tpu.memory_space<vmem>>, %arg12: memref<8x1xf32, #tpu.memory_space<vmem>>, %arg13: memref<8x256xf32, #tpu.memory_space<vmem>>, %arg14: memref<8x256xf32, #tpu.memory_space<vmem>>, %arg15: memref<8x512xf32, #tpu.memory_space<vmem>>) attributes {dimension_semantics = [#tpu.dimension_semantics<parallel>], iteration_bounds = array<i64: 2>, scalar_prefetch = 0 : i64, scratch_operands = 0 : i64, tpu.core_type = #tpu.core_type<tc>, window_params = [{transform_indices = @transform_0, window_bounds = array<i64: 8, 512>}, {pipeline_mode = #tpu.pipeline_mode<synchronous>, transform_indices = @transform_1, window_bounds = array<i64: 9, 512>}, {pipeline_mode = #tpu.pipeline_mode<synchronous>, transform_indices = @transform_2, window_bounds = array<i64: 8, 72>}, {pipeline_mode = #tpu.pipeline_mode<synchronous>, transform_indices = @transform_3, window_bounds = array<i64: 8, 1>}, {pipeline_mode = #tpu.pipeline_mode<synchronous>, transform_indices = @transform_4, window_bounds = array<i64: 8, 256>}, {pipeline_mode = #tpu.pipeline_mode<synchronous>, transform_indices = @transform_5, window_bounds = array<i64: 8, 256>}, {pipeline_mode = #tpu.pipeline_mode<synchronous>, transform_indices = @transform_6, window_bounds = array<i64: 8, 72>}, {pipeline_mode = #tpu.pipeline_mode<synchronous>, transform_indices = @transform_7, window_bounds = array<i64: 8, 1>}, {pipeline_mode = #tpu.pipeline_mode<synchronous>, transform_indices = @transform_8, window_bounds = array<i64: 8, 256>}, {pipeline_mode = #tpu.pipeline_mode<synchronous>, transform_indices = @transform_9, window_bounds = array<i64: 8, 256>}, {pipeline_mode = #tpu.pipeline_mode<synchronous>, transform_indices = @transform_10, window_bounds = array<i64: 8, 8>}, {pipeline_mode = #tpu.pipeline_mode<synchronous>, transform_indices = @transform_11, window_bounds = array<i64: 8, 1>}, {pipeline_mode = #tpu.pipeline_mode<synchronous>, transform_indices = @transform_12, window_bounds = array<i64: 8, 256>}, {pipeline_mode = #tpu.pipeline_mode<synchronous>, transform_indices = @transform_13, window_bounds = array<i64: 8, 256>}, {transform_indices = @transform_14, window_bounds = array<i64: 8, 512>}]} {
    %c0 = arith.constant 0 : index
    %c0_0 = arith.constant 0 : index
    %0 = vector.load %arg1[%c0, %c0_0] : memref<8x512xf32, #tpu.memory_space<vmem>>, vector<8x512xf32>
    %c0_1 = arith.constant 0 : index
    %c0_2 = arith.constant 0 : index
    %1 = vector.load %arg2[%c0_1, %c0_2] : memref<9x512xf32, #tpu.memory_space<vmem>>, vector<9x512xf32>
    %c0_3 = arith.constant 0 : index
    %c0_4 = arith.constant 0 : index
    %2 = vector.load %arg3[%c0_3, %c0_4] : memref<8x72xf32, #tpu.memory_space<vmem>>, vector<8x72xf32>
    %c17_i32 = arith.constant 17 : i32
    %3 = tpu.dynamic_rotate %0 by %c17_i32 dim 1 : vector<8x512xf32>, i32 -> vector<8x512xf32>
    %4 = vector.extract_strided_slice %1 {offsets = [0, 0], sizes = [1, 512], strides = [1, 1]} : vector<9x512xf32> to vector<1x512xf32>
    %5 = vector.broadcast %4 : vector<1x512xf32> to vector<8x512xf32>
    %6 = arith.mulf %3, %5 : vector<8x512xf32>
    %c16_i32 = arith.constant 16 : i32
    %7 = tpu.dynamic_rotate %0 by %c16_i32 dim 1 : vector<8x512xf32>, i32 -> vector<8x512xf32>
    %8 = vector.extract_strided_slice %1 {offsets = [1, 0], sizes = [1, 512], strides = [1, 1]} : vector<9x512xf32> to vector<1x512xf32>
    %9 = vector.broadcast %8 : vector<1x512xf32> to vector<8x512xf32>
    %10 = arith.mulf %7, %9 : vector<8x512xf32>
    %c15_i32 = arith.constant 15 : i32
    %11 = tpu.dynamic_rotate %0 by %c15_i32 dim 1 : vector<8x512xf32>, i32 -> vector<8x512xf32>
    %12 = vector.extract_strided_slice %1 {offsets = [2, 0], sizes = [1, 512], strides = [1, 1]} : vector<9x512xf32> to vector<1x512xf32>
    %13 = vector.broadcast %12 : vector<1x512xf32> to vector<8x512xf32>
    %14 = arith.mulf %11, %13 : vector<8x512xf32>
    %c1_i32 = arith.constant 1 : i32
    %15 = tpu.dynamic_rotate %0 by %c1_i32 dim 1 : vector<8x512xf32>, i32 -> vector<8x512xf32>
    %16 = vector.extract_strided_slice %1 {offsets = [3, 0], sizes = [1, 512], strides = [1, 1]} : vector<9x512xf32> to vector<1x512xf32>
    %17 = vector.broadcast %16 : vector<1x512xf32> to vector<8x512xf32>
    %18 = arith.mulf %15, %17 : vector<8x512xf32>
    %c511_i32 = arith.constant 511 : i32
    %19 = tpu.dynamic_rotate %0 by %c511_i32 dim 1 : vector<8x512xf32>, i32 -> vector<8x512xf32>
    %20 = vector.extract_strided_slice %1 {offsets = [5, 0], sizes = [1, 512], strides = [1, 1]} : vector<9x512xf32> to vector<1x512xf32>
    %21 = vector.broadcast %20 : vector<1x512xf32> to vector<8x512xf32>
    %22 = arith.mulf %19, %21 : vector<8x512xf32>
    %c497_i32 = arith.constant 497 : i32
    %23 = tpu.dynamic_rotate %0 by %c497_i32 dim 1 : vector<8x512xf32>, i32 -> vector<8x512xf32>
    %24 = vector.extract_strided_slice %1 {offsets = [6, 0], sizes = [1, 512], strides = [1, 1]} : vector<9x512xf32> to vector<1x512xf32>
    %25 = vector.broadcast %24 : vector<1x512xf32> to vector<8x512xf32>
    %26 = arith.mulf %23, %25 : vector<8x512xf32>
    %c496_i32 = arith.constant 496 : i32
    %27 = tpu.dynamic_rotate %0 by %c496_i32 dim 1 : vector<8x512xf32>, i32 -> vector<8x512xf32>
    %28 = vector.extract_strided_slice %1 {offsets = [7, 0], sizes = [1, 512], strides = [1, 1]} : vector<9x512xf32> to vector<1x512xf32>
    %29 = vector.broadcast %28 : vector<1x512xf32> to vector<8x512xf32>
    %30 = arith.mulf %27, %29 : vector<8x512xf32>
    %c495_i32 = arith.constant 495 : i32
    %31 = tpu.dynamic_rotate %0 by %c495_i32 dim 1 : vector<8x512xf32>, i32 -> vector<8x512xf32>
    %32 = vector.extract_strided_slice %1 {offsets = [8, 0], sizes = [1, 512], strides = [1, 1]} : vector<9x512xf32> to vector<1x512xf32>
    %33 = vector.broadcast %32 : vector<1x512xf32> to vector<8x512xf32>
    %34 = arith.mulf %31, %33 : vector<8x512xf32>
    %35 = tpu.concatenate %6, %10, %14, %18, %0, %22, %26, %30, %34 in 0 : vector<8x512xf32>, vector<8x512xf32>, vector<8x512xf32>, vector<8x512xf32>, vector<8x512xf32>, vector<8x512xf32>, vector<8x512xf32>, vector<8x512xf32>, vector<8x512xf32> -> vector<72x512xf32>
    %cst = arith.constant dense<0.000000e+00> : vector<8x512xf32>
    %36 = tpu.matmul %2, %35, %cst {dimension_numbers = #tpu.dot_dimension_numbers<[1], [0], [0], [1], [0, 0, 1, 1], [], []>} : vector<8x72xf32>, vector<72x512xf32>, vector<8x512xf32> -> vector<8x512xf32>
    %c0_5 = arith.constant 0 : index
    %c0_6 = arith.constant 0 : index
    %37 = vector.load %arg4[%c0_5, %c0_6] : memref<8x1xf32, #tpu.memory_space<vmem>>, vector<8x1xf32>
    %38 = vector.broadcast %37 : vector<8x1xf32> to vector<8x512xf32>
    %39 = arith.addf %36, %38 : vector<8x512xf32>
    %c0_7 = arith.constant 0 : index
    %c0_8 = arith.constant 0 : index
    %40 = vector.load %arg5[%c0_7, %c0_8] : memref<8x256xf32, #tpu.memory_space<vmem>>, vector<8x256xf32>
    %c0_9 = arith.constant 0 : index
    %c0_10 = arith.constant 0 : index
    %41 = vector.load %arg6[%c0_9, %c0_10] : memref<8x256xf32, #tpu.memory_space<vmem>>, vector<8x256xf32>
    %42 = vector.extract_strided_slice %39 {offsets = [0, 0], sizes = [8, 256], strides = [1, 1]} : vector<8x512xf32> to vector<8x256xf32>
    %cst_11 = arith.constant dense<0.000000e+00> : vector<8xf32>
    %43 = vector.multi_reduction <add>, %42, %cst_11 [1] : vector<8x256xf32> to vector<8xf32>
    %44 = vector.shape_cast %43 : vector<8xf32> to vector<8x1xf32>
    %cst_12 = arith.constant dense<0.000000e+00> : vector<1xf32>
    %45 = vector.multi_reduction <add>, %44, %cst_12 [0] : vector<8x1xf32> to vector<1xf32>
    %46 = vector.shape_cast %45 : vector<1xf32> to vector<1x1xf32>
    %47 = arith.mulf %42, %42 : vector<8x256xf32>
    %cst_13 = arith.constant dense<0.000000e+00> : vector<8xf32>
    %48 = vector.multi_reduction <add>, %47, %cst_13 [1] : vector<8x256xf32> to vector<8xf32>
    %49 = vector.shape_cast %48 : vector<8xf32> to vector<8x1xf32>
    %cst_14 = arith.constant dense<0.000000e+00> : vector<1xf32>
    %50 = vector.multi_reduction <add>, %49, %cst_14 [0] : vector<8x1xf32> to vector<1xf32>
    %51 = vector.shape_cast %50 : vector<1xf32> to vector<1x1xf32>
    %cst_15 = arith.constant 4.8828125E-4 : f32
    %52 = vector.broadcast %cst_15 : f32 to vector<1x1xf32>
    %53 = arith.mulf %46, %52 : vector<1x1xf32>
    %cst_16 = arith.constant 4.8828125E-4 : f32
    %54 = vector.broadcast %cst_16 : f32 to vector<1x1xf32>
    %55 = arith.mulf %51, %54 : vector<1x1xf32>
    %56 = arith.mulf %53, %53 : vector<1x1xf32>
    %57 = arith.subf %55, %56 : vector<1x1xf32>
    %58 = vector.broadcast %53 : vector<1x1xf32> to vector<8x256xf32>
    %59 = arith.subf %42, %58 : vector<8x256xf32>
    %cst_17 = arith.constant 9.99999974E-6 : f32
    %60 = vector.broadcast %cst_17 : f32 to vector<1x1xf32>
    %61 = arith.addf %57, %60 : vector<1x1xf32>
    %62 = math.rsqrt %61 : vector<1x1xf32>
    %63 = vector.broadcast %62 : vector<1x1xf32> to vector<8x256xf32>
    %64 = arith.mulf %59, %63 : vector<8x256xf32>
    %65 = arith.mulf %64, %40 : vector<8x256xf32>
    %66 = arith.addf %65, %41 : vector<8x256xf32>
    %cst_18 = arith.constant 0.000000e+00 : f32
    %67 = vector.broadcast %cst_18 : f32 to vector<8x256xf32>
    %68 = arith.maximumf %66, %67 : vector<8x256xf32>
    %69 = vector.extract_strided_slice %39 {offsets = [0, 256], sizes = [8, 256], strides = [1, 1]} : vector<8x512xf32> to vector<8x256xf32>
    %cst_19 = arith.constant dense<0.000000e+00> : vector<8xf32>
    %70 = vector.multi_reduction <add>, %69, %cst_19 [1] : vector<8x256xf32> to vector<8xf32>
    %71 = vector.shape_cast %70 : vector<8xf32> to vector<8x1xf32>
    %cst_20 = arith.constant dense<0.000000e+00> : vector<1xf32>
    %72 = vector.multi_reduction <add>, %71, %cst_20 [0] : vector<8x1xf32> to vector<1xf32>
    %73 = vector.shape_cast %72 : vector<1xf32> to vector<1x1xf32>
    %74 = arith.mulf %69, %69 : vector<8x256xf32>
    %cst_21 = arith.constant dense<0.000000e+00> : vector<8xf32>
    %75 = vector.multi_reduction <add>, %74, %cst_21 [1] : vector<8x256xf32> to vector<8xf32>
    %76 = vector.shape_cast %75 : vector<8xf32> to vector<8x1xf32>
    %cst_22 = arith.constant dense<0.000000e+00> : vector<1xf32>
    %77 = vector.multi_reduction <add>, %76, %cst_22 [0] : vector<8x1xf32> to vector<1xf32>
    %78 = vector.shape_cast %77 : vector<1xf32> to vector<1x1xf32>
    %cst_23 = arith.constant 4.8828125E-4 : f32
    %79 = vector.broadcast %cst_23 : f32 to vector<1x1xf32>
    %80 = arith.mulf %73, %79 : vector<1x1xf32>
    %cst_24 = arith.constant 4.8828125E-4 : f32
    %81 = vector.broadcast %cst_24 : f32 to vector<1x1xf32>
    %82 = arith.mulf %78, %81 : vector<1x1xf32>
    %83 = arith.mulf %80, %80 : vector<1x1xf32>
    %84 = arith.subf %82, %83 : vector<1x1xf32>
    %85 = vector.broadcast %80 : vector<1x1xf32> to vector<8x256xf32>
    %86 = arith.subf %69, %85 : vector<8x256xf32>
    %cst_25 = arith.constant 9.99999974E-6 : f32
    %87 = vector.broadcast %cst_25 : f32 to vector<1x1xf32>
    %88 = arith.addf %84, %87 : vector<1x1xf32>
    %89 = math.rsqrt %88 : vector<1x1xf32>
    %90 = vector.broadcast %89 : vector<1x1xf32> to vector<8x256xf32>
    %91 = arith.mulf %86, %90 : vector<8x256xf32>
    %92 = arith.mulf %91, %40 : vector<8x256xf32>
    %93 = arith.addf %92, %41 : vector<8x256xf32>
    %cst_26 = arith.constant 0.000000e+00 : f32
    %94 = vector.broadcast %cst_26 : f32 to vector<8x256xf32>
    %95 = arith.maximumf %93, %94 : vector<8x256xf32>
    %96 = tpu.concatenate %68, %95 in 1 : vector<8x256xf32>, vector<8x256xf32> -> vector<8x512xf32>
    %c0_27 = arith.constant 0 : index
    %c0_28 = arith.constant 0 : index
    %97 = vector.load %arg7[%c0_27, %c0_28] : memref<8x72xf32, #tpu.memory_space<vmem>>, vector<8x72xf32>
    %c17_i32_29 = arith.constant 17 : i32
    %98 = tpu.dynamic_rotate %96 by %c17_i32_29 dim 1 : vector<8x512xf32>, i32 -> vector<8x512xf32>
    %99 = vector.extract_strided_slice %1 {offsets = [0, 0], sizes = [1, 512], strides = [1, 1]} : vector<9x512xf32> to vector<1x512xf32>
    %100 = vector.broadcast %99 : vector<1x512xf32> to vector<8x512xf32>
    %101 = arith.mulf %98, %100 : vector<8x512xf32>
    %c16_i32_30 = arith.constant 16 : i32
    %102 = tpu.dynamic_rotate %96 by %c16_i32_30 dim 1 : vector<8x512xf32>, i32 -> vector<8x512xf32>
    %103 = vector.extract_strided_slice %1 {offsets = [1, 0], sizes = [1, 512], strides = [1, 1]} : vector<9x512xf32> to vector<1x512xf32>
    %104 = vector.broadcast %103 : vector<1x512xf32> to vector<8x512xf32>
    %105 = arith.mulf %102, %104 : vector<8x512xf32>
    %c15_i32_31 = arith.constant 15 : i32
    %106 = tpu.dynamic_rotate %96 by %c15_i32_31 dim 1 : vector<8x512xf32>, i32 -> vector<8x512xf32>
    %107 = vector.extract_strided_slice %1 {offsets = [2, 0], sizes = [1, 512], strides = [1, 1]} : vector<9x512xf32> to vector<1x512xf32>
    %108 = vector.broadcast %107 : vector<1x512xf32> to vector<8x512xf32>
    %109 = arith.mulf %106, %108 : vector<8x512xf32>
    %c1_i32_32 = arith.constant 1 : i32
    %110 = tpu.dynamic_rotate %96 by %c1_i32_32 dim 1 : vector<8x512xf32>, i32 -> vector<8x512xf32>
    %111 = vector.extract_strided_slice %1 {offsets = [3, 0], sizes = [1, 512], strides = [1, 1]} : vector<9x512xf32> to vector<1x512xf32>
    %112 = vector.broadcast %111 : vector<1x512xf32> to vector<8x512xf32>
    %113 = arith.mulf %110, %112 : vector<8x512xf32>
    %c511_i32_33 = arith.constant 511 : i32
    %114 = tpu.dynamic_rotate %96 by %c511_i32_33 dim 1 : vector<8x512xf32>, i32 -> vector<8x512xf32>
    %115 = vector.extract_strided_slice %1 {offsets = [5, 0], sizes = [1, 512], strides = [1, 1]} : vector<9x512xf32> to vector<1x512xf32>
    %116 = vector.broadcast %115 : vector<1x512xf32> to vector<8x512xf32>
    %117 = arith.mulf %114, %116 : vector<8x512xf32>
    %c497_i32_34 = arith.constant 497 : i32
    %118 = tpu.dynamic_rotate %96 by %c497_i32_34 dim 1 : vector<8x512xf32>, i32 -> vector<8x512xf32>
    %119 = vector.extract_strided_slice %1 {offsets = [6, 0], sizes = [1, 512], strides = [1, 1]} : vector<9x512xf32> to vector<1x512xf32>
    %120 = vector.broadcast %119 : vector<1x512xf32> to vector<8x512xf32>
    %121 = arith.mulf %118, %120 : vector<8x512xf32>
    %c496_i32_35 = arith.constant 496 : i32
    %122 = tpu.dynamic_rotate %96 by %c496_i32_35 dim 1 : vector<8x512xf32>, i32 -> vector<8x512xf32>
    %123 = vector.extract_strided_slice %1 {offsets = [7, 0], sizes = [1, 512], strides = [1, 1]} : vector<9x512xf32> to vector<1x512xf32>
    %124 = vector.broadcast %123 : vector<1x512xf32> to vector<8x512xf32>
    %125 = arith.mulf %122, %124 : vector<8x512xf32>
    %c495_i32_36 = arith.constant 495 : i32
    %126 = tpu.dynamic_rotate %96 by %c495_i32_36 dim 1 : vector<8x512xf32>, i32 -> vector<8x512xf32>
    %127 = vector.extract_strided_slice %1 {offsets = [8, 0], sizes = [1, 512], strides = [1, 1]} : vector<9x512xf32> to vector<1x512xf32>
    %128 = vector.broadcast %127 : vector<1x512xf32> to vector<8x512xf32>
    %129 = arith.mulf %126, %128 : vector<8x512xf32>
    %130 = tpu.concatenate %101, %105, %109, %113, %96, %117, %121, %125, %129 in 0 : vector<8x512xf32>, vector<8x512xf32>, vector<8x512xf32>, vector<8x512xf32>, vector<8x512xf32>, vector<8x512xf32>, vector<8x512xf32>, vector<8x512xf32>, vector<8x512xf32> -> vector<72x512xf32>
    %cst_37 = arith.constant dense<0.000000e+00> : vector<8x512xf32>
    %131 = tpu.matmul %97, %130, %cst_37 {dimension_numbers = #tpu.dot_dimension_numbers<[1], [0], [0], [1], [0, 0, 1, 1], [], []>} : vector<8x72xf32>, vector<72x512xf32>, vector<8x512xf32> -> vector<8x512xf32>
    %c0_38 = arith.constant 0 : index
    %c0_39 = arith.constant 0 : index
    %132 = vector.load %arg8[%c0_38, %c0_39] : memref<8x1xf32, #tpu.memory_space<vmem>>, vector<8x1xf32>
    %133 = vector.broadcast %132 : vector<8x1xf32> to vector<8x512xf32>
    %134 = arith.addf %131, %133 : vector<8x512xf32>
    %c0_40 = arith.constant 0 : index
    %c0_41 = arith.constant 0 : index
    %135 = vector.load %arg9[%c0_40, %c0_41] : memref<8x256xf32, #tpu.memory_space<vmem>>, vector<8x256xf32>
    %c0_42 = arith.constant 0 : index
    %c0_43 = arith.constant 0 : index
    %136 = vector.load %arg10[%c0_42, %c0_43] : memref<8x256xf32, #tpu.memory_space<vmem>>, vector<8x256xf32>
    %137 = vector.extract_strided_slice %134 {offsets = [0, 0], sizes = [8, 256], strides = [1, 1]} : vector<8x512xf32> to vector<8x256xf32>
    %cst_44 = arith.constant dense<0.000000e+00> : vector<8xf32>
    %138 = vector.multi_reduction <add>, %137, %cst_44 [1] : vector<8x256xf32> to vector<8xf32>
    %139 = vector.shape_cast %138 : vector<8xf32> to vector<8x1xf32>
    %cst_45 = arith.constant dense<0.000000e+00> : vector<1xf32>
    %140 = vector.multi_reduction <add>, %139, %cst_45 [0] : vector<8x1xf32> to vector<1xf32>
    %141 = vector.shape_cast %140 : vector<1xf32> to vector<1x1xf32>
    %142 = arith.mulf %137, %137 : vector<8x256xf32>
    %cst_46 = arith.constant dense<0.000000e+00> : vector<8xf32>
    %143 = vector.multi_reduction <add>, %142, %cst_46 [1] : vector<8x256xf32> to vector<8xf32>
    %144 = vector.shape_cast %143 : vector<8xf32> to vector<8x1xf32>
    %cst_47 = arith.constant dense<0.000000e+00> : vector<1xf32>
    %145 = vector.multi_reduction <add>, %144, %cst_47 [0] : vector<8x1xf32> to vector<1xf32>
    %146 = vector.shape_cast %145 : vector<1xf32> to vector<1x1xf32>
    %cst_48 = arith.constant 4.8828125E-4 : f32
    %147 = vector.broadcast %cst_48 : f32 to vector<1x1xf32>
    %148 = arith.mulf %141, %147 : vector<1x1xf32>
    %cst_49 = arith.constant 4.8828125E-4 : f32
    %149 = vector.broadcast %cst_49 : f32 to vector<1x1xf32>
    %150 = arith.mulf %146, %149 : vector<1x1xf32>
    %151 = arith.mulf %148, %148 : vector<1x1xf32>
    %152 = arith.subf %150, %151 : vector<1x1xf32>
    %153 = vector.broadcast %148 : vector<1x1xf32> to vector<8x256xf32>
    %154 = arith.subf %137, %153 : vector<8x256xf32>
    %cst_50 = arith.constant 9.99999974E-6 : f32
    %155 = vector.broadcast %cst_50 : f32 to vector<1x1xf32>
    %156 = arith.addf %152, %155 : vector<1x1xf32>
    %157 = math.rsqrt %156 : vector<1x1xf32>
    %158 = vector.broadcast %157 : vector<1x1xf32> to vector<8x256xf32>
    %159 = arith.mulf %154, %158 : vector<8x256xf32>
    %160 = arith.mulf %159, %135 : vector<8x256xf32>
    %161 = arith.addf %160, %136 : vector<8x256xf32>
    %162 = vector.extract_strided_slice %134 {offsets = [0, 256], sizes = [8, 256], strides = [1, 1]} : vector<8x512xf32> to vector<8x256xf32>
    %cst_51 = arith.constant dense<0.000000e+00> : vector<8xf32>
    %163 = vector.multi_reduction <add>, %162, %cst_51 [1] : vector<8x256xf32> to vector<8xf32>
    %164 = vector.shape_cast %163 : vector<8xf32> to vector<8x1xf32>
    %cst_52 = arith.constant dense<0.000000e+00> : vector<1xf32>
    %165 = vector.multi_reduction <add>, %164, %cst_52 [0] : vector<8x1xf32> to vector<1xf32>
    %166 = vector.shape_cast %165 : vector<1xf32> to vector<1x1xf32>
    %167 = arith.mulf %162, %162 : vector<8x256xf32>
    %cst_53 = arith.constant dense<0.000000e+00> : vector<8xf32>
    %168 = vector.multi_reduction <add>, %167, %cst_53 [1] : vector<8x256xf32> to vector<8xf32>
    %169 = vector.shape_cast %168 : vector<8xf32> to vector<8x1xf32>
    %cst_54 = arith.constant dense<0.000000e+00> : vector<1xf32>
    %170 = vector.multi_reduction <add>, %169, %cst_54 [0] : vector<8x1xf32> to vector<1xf32>
    %171 = vector.shape_cast %170 : vector<1xf32> to vector<1x1xf32>
    %cst_55 = arith.constant 4.8828125E-4 : f32
    %172 = vector.broadcast %cst_55 : f32 to vector<1x1xf32>
    %173 = arith.mulf %166, %172 : vector<1x1xf32>
    %cst_56 = arith.constant 4.8828125E-4 : f32
    %174 = vector.broadcast %cst_56 : f32 to vector<1x1xf32>
    %175 = arith.mulf %171, %174 : vector<1x1xf32>
    %176 = arith.mulf %173, %173 : vector<1x1xf32>
    %177 = arith.subf %175, %176 : vector<1x1xf32>
    %178 = vector.broadcast %173 : vector<1x1xf32> to vector<8x256xf32>
    %179 = arith.subf %162, %178 : vector<8x256xf32>
    %cst_57 = arith.constant 9.99999974E-6 : f32
    %180 = vector.broadcast %cst_57 : f32 to vector<1x1xf32>
    %181 = arith.addf %177, %180 : vector<1x1xf32>
    %182 = math.rsqrt %181 : vector<1x1xf32>
    %183 = vector.broadcast %182 : vector<1x1xf32> to vector<8x256xf32>
    %184 = arith.mulf %179, %183 : vector<8x256xf32>
    %185 = arith.mulf %184, %135 : vector<8x256xf32>
    %186 = arith.addf %185, %136 : vector<8x256xf32>
    %187 = tpu.concatenate %161, %186 in 1 : vector<8x256xf32>, vector<8x256xf32> -> vector<8x512xf32>
    %c0_58 = arith.constant 0 : index
    %c0_59 = arith.constant 0 : index
    %188 = vector.load %arg11[%c0_58, %c0_59] : memref<8x8xf32, #tpu.memory_space<vmem>>, vector<8x8xf32>
    %cst_60 = arith.constant dense<0.000000e+00> : vector<8x512xf32>
    %189 = tpu.matmul %188, %0, %cst_60 {dimension_numbers = #tpu.dot_dimension_numbers<[1], [0], [0], [1], [0, 0, 1, 1], [], []>} : vector<8x8xf32>, vector<8x512xf32>, vector<8x512xf32> -> vector<8x512xf32>
    %c0_61 = arith.constant 0 : index
    %c0_62 = arith.constant 0 : index
    %190 = vector.load %arg12[%c0_61, %c0_62] : memref<8x1xf32, #tpu.memory_space<vmem>>, vector<8x1xf32>
    %191 = vector.broadcast %190 : vector<8x1xf32> to vector<8x512xf32>
    %192 = arith.addf %189, %191 : vector<8x512xf32>
    %c0_63 = arith.constant 0 : index
    %c0_64 = arith.constant 0 : index
    %193 = vector.load %arg13[%c0_63, %c0_64] : memref<8x256xf32, #tpu.memory_space<vmem>>, vector<8x256xf32>
    %c0_65 = arith.constant 0 : index
    %c0_66 = arith.constant 0 : index
    %194 = vector.load %arg14[%c0_65, %c0_66] : memref<8x256xf32, #tpu.memory_space<vmem>>, vector<8x256xf32>
    %195 = vector.extract_strided_slice %192 {offsets = [0, 0], sizes = [8, 256], strides = [1, 1]} : vector<8x512xf32> to vector<8x256xf32>
    %cst_67 = arith.constant dense<0.000000e+00> : vector<8xf32>
    %196 = vector.multi_reduction <add>, %195, %cst_67 [1] : vector<8x256xf32> to vector<8xf32>
    %197 = vector.shape_cast %196 : vector<8xf32> to vector<8x1xf32>
    %cst_68 = arith.constant dense<0.000000e+00> : vector<1xf32>
    %198 = vector.multi_reduction <add>, %197, %cst_68 [0] : vector<8x1xf32> to vector<1xf32>
    %199 = vector.shape_cast %198 : vector<1xf32> to vector<1x1xf32>
    %200 = arith.mulf %195, %195 : vector<8x256xf32>
    %cst_69 = arith.constant dense<0.000000e+00> : vector<8xf32>
    %201 = vector.multi_reduction <add>, %200, %cst_69 [1] : vector<8x256xf32> to vector<8xf32>
    %202 = vector.shape_cast %201 : vector<8xf32> to vector<8x1xf32>
    %cst_70 = arith.constant dense<0.000000e+00> : vector<1xf32>
    %203 = vector.multi_reduction <add>, %202, %cst_70 [0] : vector<8x1xf32> to vector<1xf32>
    %204 = vector.shape_cast %203 : vector<1xf32> to vector<1x1xf32>
    %cst_71 = arith.constant 4.8828125E-4 : f32
    %205 = vector.broadcast %cst_71 : f32 to vector<1x1xf32>
    %206 = arith.mulf %199, %205 : vector<1x1xf32>
    %cst_72 = arith.constant 4.8828125E-4 : f32
    %207 = vector.broadcast %cst_72 : f32 to vector<1x1xf32>
    %208 = arith.mulf %204, %207 : vector<1x1xf32>
    %209 = arith.mulf %206, %206 : vector<1x1xf32>
    %210 = arith.subf %208, %209 : vector<1x1xf32>
    %211 = vector.broadcast %206 : vector<1x1xf32> to vector<8x256xf32>
    %212 = arith.subf %195, %211 : vector<8x256xf32>
    %cst_73 = arith.constant 9.99999974E-6 : f32
    %213 = vector.broadcast %cst_73 : f32 to vector<1x1xf32>
    %214 = arith.addf %210, %213 : vector<1x1xf32>
    %215 = math.rsqrt %214 : vector<1x1xf32>
    %216 = vector.broadcast %215 : vector<1x1xf32> to vector<8x256xf32>
    %217 = arith.mulf %212, %216 : vector<8x256xf32>
    %218 = arith.mulf %217, %193 : vector<8x256xf32>
    %219 = arith.addf %218, %194 : vector<8x256xf32>
    %220 = vector.extract_strided_slice %192 {offsets = [0, 256], sizes = [8, 256], strides = [1, 1]} : vector<8x512xf32> to vector<8x256xf32>
    %cst_74 = arith.constant dense<0.000000e+00> : vector<8xf32>
    %221 = vector.multi_reduction <add>, %220, %cst_74 [1] : vector<8x256xf32> to vector<8xf32>
    %222 = vector.shape_cast %221 : vector<8xf32> to vector<8x1xf32>
    %cst_75 = arith.constant dense<0.000000e+00> : vector<1xf32>
    %223 = vector.multi_reduction <add>, %222, %cst_75 [0] : vector<8x1xf32> to vector<1xf32>
    %224 = vector.shape_cast %223 : vector<1xf32> to vector<1x1xf32>
    %225 = arith.mulf %220, %220 : vector<8x256xf32>
    %cst_76 = arith.constant dense<0.000000e+00> : vector<8xf32>
    %226 = vector.multi_reduction <add>, %225, %cst_76 [1] : vector<8x256xf32> to vector<8xf32>
    %227 = vector.shape_cast %226 : vector<8xf32> to vector<8x1xf32>
    %cst_77 = arith.constant dense<0.000000e+00> : vector<1xf32>
    %228 = vector.multi_reduction <add>, %227, %cst_77 [0] : vector<8x1xf32> to vector<1xf32>
    %229 = vector.shape_cast %228 : vector<1xf32> to vector<1x1xf32>
    %cst_78 = arith.constant 4.8828125E-4 : f32
    %230 = vector.broadcast %cst_78 : f32 to vector<1x1xf32>
    %231 = arith.mulf %224, %230 : vector<1x1xf32>
    %cst_79 = arith.constant 4.8828125E-4 : f32
    %232 = vector.broadcast %cst_79 : f32 to vector<1x1xf32>
    %233 = arith.mulf %229, %232 : vector<1x1xf32>
    %234 = arith.mulf %231, %231 : vector<1x1xf32>
    %235 = arith.subf %233, %234 : vector<1x1xf32>
    %236 = vector.broadcast %231 : vector<1x1xf32> to vector<8x256xf32>
    %237 = arith.subf %220, %236 : vector<8x256xf32>
    %cst_80 = arith.constant 9.99999974E-6 : f32
    %238 = vector.broadcast %cst_80 : f32 to vector<1x1xf32>
    %239 = arith.addf %235, %238 : vector<1x1xf32>
    %240 = math.rsqrt %239 : vector<1x1xf32>
    %241 = vector.broadcast %240 : vector<1x1xf32> to vector<8x256xf32>
    %242 = arith.mulf %237, %241 : vector<8x256xf32>
    %243 = arith.mulf %242, %193 : vector<8x256xf32>
    %244 = arith.addf %243, %194 : vector<8x256xf32>
    %245 = tpu.concatenate %219, %244 in 1 : vector<8x256xf32>, vector<8x256xf32> -> vector<8x512xf32>
    %246 = arith.addf %187, %245 : vector<8x512xf32>
    %cst_81 = arith.constant 0.000000e+00 : f32
    %247 = vector.broadcast %cst_81 : f32 to vector<8x512xf32>
    %248 = arith.maximumf %246, %247 : vector<8x512xf32>
    %c0_82 = arith.constant 0 : index
    %c0_83 = arith.constant 0 : index
    %249 = vector.load %arg15[%c0_82, %c0_83] : memref<8x512xf32, #tpu.memory_space<vmem>>, vector<8x512xf32>
    tpu.vector_store %arg15[%c0_82, %c0_83], %248 {strides = array<i32>} : memref<8x512xf32, #tpu.memory_space<vmem>>, vector<8x512xf32>,
    return
  }
  func.func @transform_0(%arg0: i32) -> (i32, i32) {
    %c0_i32 = arith.constant 0 : i32
    %c0_i32_0 = arith.constant 0 : i32
    return %c0_i32, %arg0 : i32, i32
  }
  func.func @transform_1(%arg0: i32) -> (i32, i32) {
    %c0_i32 = arith.constant 0 : i32
    %c0_i32_0 = arith.constant 0 : i32
    %c0_i32_1 = arith.constant 0 : i32
    return %c0_i32, %c0_i32_0 : i32, i32
  }
  func.func @transform_2(%arg0: i32) -> (i32, i32) {
    %c0_i32 = arith.constant 0 : i32
    %c0_i32_0 = arith.constant 0 : i32
    %c0_i32_1 = arith.constant 0 : i32
    return %c0_i32, %c0_i32_0 : i32, i32
  }
  func.func @transform_3(%arg0: i32) -> (i32, i32) {
    %c0_i32 = arith.constant 0 : i32
    %c0_i32_0 = arith.constant 0 : i32
    %c0_i32_1 = arith.constant 0 : i32
    return %c0_i32, %c0_i32_0 : i32, i32
  }
  func.func @transform_4(%arg0: i32) -> (i32, i32) {
    %c0_i32 = arith.constant 0 : i32
    %c0_i32_0 = arith.constant 0 : i32
    %c0_i32_1 = arith.constant 0 : i32
    return %c0_i32, %c0_i32_0 : i32, i32
  }
  func.func @transform_5(%arg0: i32) -> (i32, i32) {
    %c0_i32 = arith.constant 0 : i32
    %c0_i32_0 = arith.constant 0 : i32
    %c0_i32_1 = arith.constant 0 : i32
    return %c0_i32, %c0_i32_0 : i32, i32
  }
  func.func @transform_6(%arg0: i32) -> (i32, i32) {
    %c0_i32 = arith.constant 0 : i32
    %c0_i32_0 = arith.constant 0 : i32
    %c0_i32_1 = arith.constant 0 : i32
    return %c0_i32, %c0_i32_0 : i32, i32
  }
  func.func @transform_7(%arg0: i32) -> (i32, i32) {
    %c0_i32 = arith.constant 0 : i32
    %c0_i32_0 = arith.constant 0 : i32
    %c0_i32_1 = arith.constant 0 : i32
    return %c0_i32, %c0_i32_0 : i32, i32
  }
  func.func @transform_8(%arg0: i32) -> (i32, i32) {
    %c0_i32 = arith.constant 0 : i32
    %c0_i32_0 = arith.constant 0 : i32
    %c0_i32_1 = arith.constant 0 : i32
    return %c0_i32, %c0_i32_0 : i32, i32
  }
  func.func @transform_9(%arg0: i32) -> (i32, i32) {
    %c0_i32 = arith.constant 0 : i32
    %c0_i32_0 = arith.constant 0 : i32
    %c0_i32_1 = arith.constant 0 : i32
    return %c0_i32, %c0_i32_0 : i32, i32
  }
  func.func @transform_10(%arg0: i32) -> (i32, i32) {
    %c0_i32 = arith.constant 0 : i32
    %c0_i32_0 = arith.constant 0 : i32
    %c0_i32_1 = arith.constant 0 : i32
    return %c0_i32, %c0_i32_0 : i32, i32
  }
  func.func @transform_11(%arg0: i32) -> (i32, i32) {
    %c0_i32 = arith.constant 0 : i32
    %c0_i32_0 = arith.constant 0 : i32
    %c0_i32_1 = arith.constant 0 : i32
    return %c0_i32, %c0_i32_0 : i32, i32
  }
  func.func @transform_12(%arg0: i32) -> (i32, i32) {
    %c0_i32 = arith.constant 0 : i32
    %c0_i32_0 = arith.constant 0 : i32
    %c0_i32_1 = arith.constant 0 : i32
    return %c0_i32, %c0_i32_0 : i32, i32
  }
  func.func @transform_13(%arg0: i32) -> (i32, i32) {
    %c0_i32 = arith.constant 0 : i32
    %c0_i32_0 = arith.constant 0 : i32
    %c0_i32_1 = arith.constant 0 : i32
    return %c0_i32, %c0_i32_0 : i32, i32
  }
  func.func @transform_14(%arg0: i32) -> (i32, i32) {
    %c0_i32 = arith.constant 0 : i32
    %c0_i32_0 = arith.constant 0 : i32
    return %c0_i32, %arg0 : i32, i32
  }
}

</mosaic_0001>

<bundles_post_ra>
// kernel: residual_block_forward.1
= control target key start
LH: loop header
LB: loop body
LE: loop exit
PB: predicated region body
PF: predicated region fallthrough
CT: control target
= control target key end

     0   :  { %s1546_s29 = smov 0   ;;  %s2269_s0 = inlined_call_operand.vmem [shape: f32[8,1024], index: 0, kind: input, shape index: {}]   ;;  %s2270_s1 = inlined_call_operand.vmem [shape: f32[9,512], index: 1, kind: input, shape index: {}]   ;;  %s2271_s2 = inlined_call_operand.vmem [shape: f32[8,72], index: 2, kind: input, shape index: {}]   ;;  %s2272_s3 = inlined_call_operand.vmem [shape: f32[8,1], index: 3, kind: input, shape index: {}]   ;;  %s2273_s4 = inlined_call_operand.vmem [shape: f32[8,256], index: 4, kind: input, shape index: {}]   ;;  %s2274_s5 = inlined_call_operand.vmem [shape: f32[8,256], index: 5, kind: input, shape index: {}]   ;;  %s2275_s6 = inlined_call_operand.vmem [shape: f32[8,72], index: 6, kind: input, shape index: {}]   ;;  %s2276_s7 = inlined_call_operand.vmem [shape: f32[8,1], index: 7, kind: input, shape index: {}]   ;;  %s2277_s8 = inlined_call_operand.vmem [shape: f32[8,256], index: 8, kind: input, shape index: {}]   ;;  %s2278_s9 = inlined_call_operand.vmem [shape: f32[8,256], index: 9, kind: input, shape index: {}]   ;;  %s2279_s10 = inlined_call_operand.vmem [shape: f32[8,8], index: 10, kind: input, shape index: {}]   ;;  %s2280_s11 = inlined_call_operand.vmem [shape: f32[8,1], index: 11, kind: input, shape index: {}]   ;;  %s2281_s12 = inlined_call_operand.vmem [shape: f32[8,256], index: 12, kind: input, shape index: {}]   ;;  %s2282_s13 = inlined_call_operand.vmem [shape: f32[8,256], index: 13, kind: input, shape index: {}]   ;;  %s2283_s14 = inlined_call_operand.vmem [shape: f32[8,1024], index: 14, kind: output, shape index: {}]  }
   0x1 LB: > { %s1395_s30 = sadd.s32 4294967295, %s1460_s29   ;;  %p1399_p0 = scmp.ge.s32.totalorder %s1460_s29, 1  ;;  %s1460_s29 = sphi %s1546_s29, %s24_s29  }
   0x2   : > { %p413_p1 = scmp.lt.s32.totalorder %s1460_s29, 3 }
   0x4   : > { %p414_p2 = pnand %p1399_p0, %p413_p1 }
   0x5   : > { %s1400_s15 = sshll.u32 (!%p414_p2), %s1395_s30, 2  ;;  %s1462_s20 = smov (!%p414_p2), 111  }
   0x6   : > { %417 = sbr.rel (%p414_p2) target bundleno = 1031 (0x407), region = 76  ;;  %p460_p3 = scmp.lt.s32.totalorder (!%p414_p2), %s1400_s15, 7 }
   0x7   : > { %s1463_s21 = smov (!%p414_p2), 112   ;;  %s1464_s22 = smov (!%p414_p2), 113  }
   0x8   : > { %s1465_s23 = smov (!%p414_p2), 127   ;;  %s2289_s24 = smov (!%p414_p2), 1  }
   0x9   : > { %s1467_s25 = smov (!%p414_p2), 15   ;;  %s2287_s26 = smov (!%p414_p2), 16  }
   0xa   : > { %s2285_s27 = smov (!%p414_p2), 17   ;;  %s2297_s17 = smov (!%p414_p2), 1  }
   0xb   : > { %s2308_s15 = smov (!%p460_p3, %s1400_s15), 7  ;;  %v492_v5 = vlaneseq  ;;  %v1648_v8 = vld [vmem:[%s2270_s1 + $0x38] ss:$0 sm:$0xff]  ;;  %v1661_v15 = vld [vmem:[%s2270_s1 + $0x10] sm:$0xff]  ;;  %v1717_v46 = vld [vmem:[%s2270_s1 + $0x20] ss:$0 sm:$0xff] }
   0xc   : > { %s2284_s16 = sshll.u32 %s2308_s15, 3  ;;  %v1656_v14 = vld [vmem:[%s2270_s1 + $0x18] sm:$0xff]  ;;  %v1668_v17 = vld [vmem:[%s2270_s1 + $0x30] ss:$0 sm:$0xff]  ;;  %v627_v21 = vperm.slane %v1661_v15, 7  ;;  %v606_v28 = vperm.slane %v1661_v15, 6 }
   0xd   : > { %s1562_s19 = scalar_lea.vmem %s2269_s0, %s2284_s16  ;;  %v1642_v7 = vand.u32 127, %v492_v5  ;;  %v628_v16 = vperm.slane %v1656_v14, 7  ;;  %v607_v29 = vperm.slane %v1656_v14, 6  ;;  %v585_v37 = vperm.slane %v1661_v15, 5  ;;  %v1722_v47 = vld [vmem:[%s2270_s1 + $0x28] ss:$0 sm:$0xff] }
   0xe   : > { %v1565_v0 = vld [vmem:[%s1562_s19 + $0x18] sm:$0xff]  ;;  %v1568_v1 = vld [vmem:[%s1562_s19 + $0x10] sm:$0xff]  ;;  %v1571_v2 = vld [vmem:[%s1562_s19] sm:$0xff]  ;;  %v586_v38 = vperm.slane %v1656_v14, 5  ;;  %vm660_vm8 = vcmask 588800   ;;  %s2298_s18 = smov 16  }
   0xf   : > { %639 = vrot.lane.b32.xlu1 %v1565_v0, %s1462_s20  ;;  %616 = vrot.lane.b32.xlu2 %v1568_v1, %s1463_s21  ;;  %v1598_v3 = vld [vmem:[%s1562_s19 + $0x8] sm:$0xff]  ;;  %vm641_vm0 = vcmp.lt.s32.totalorder %v1642_v7, 111  ;;  %vm620_vm1 = vcmp.lt.s32.totalorder %v1642_v7, 112  ;;  %vm599_vm2 = vcmp.lt.s32.totalorder %v1642_v7, 113  ;;  %vm578_vm3 = vcmp.lt.s32.totalorder %v1642_v7, 127  ;;  %v1728_v49 = vld [vmem:[%s2270_s1] sm:$0xff] }
  0x10   : > { %633 = vrot.lane.b32.xlu0 %v1571_v2, %s1462_s20  ;;  %v1733_v50 = vld [vmem:[%s2270_s1 + $0x8] sm:$0xff]  ;;  %v625_v52 = vperm.slane %v1728_v49, 7  ;;  %v604_v60 = vperm.slane %v1728_v49, 6  ;;  %vm557_vm4 = vcmp.lt.s32.totalorder %v1642_v7, 1  ;;  %vm536_vm5 = vcmp.lt.s32.totalorder %v1642_v7, 15  ;;  %s2299_s28 = smov 17  }
  0x11   : > { %v626_v53 = vperm.slane %v1733_v50, 7  ;;  %v605_v61 = vperm.slane %v1733_v50, 6  ;;  %vm515_vm6 = vcmp.lt.s32.totalorder %v1642_v7, 16  ;;  %vm494_vm7 = vcmp.lt.s32.totalorder %v1642_v7, 17 }
  0x12   : > { %vm1153_vm15 = vcmask 64512  }
  0x17   : > { %618 = vrot.lane.b32.xlu2 %v1565_v0, %s1463_s21  ;;  %612 = vrot.lane.b32.xlu1 %v1571_v2, %s1463_s21 }
  0x18   : > { %637 = vrot.lane.b32.xlu0 %v1568_v1, %s1462_s20 }
  0x1f   : > { %597 = vrot.lane.b32.xlu2 %v1565_v0, %s1464_s22  ;;  %595 = vrot.lane.b32.xlu1 %v1568_v1, %s1464_s22 }
  0x20   : > { %591 = vrot.lane.b32.xlu0 %v1571_v2, %s1464_s22 }
  0x27   : > { %576 = vrot.lane.b32.xlu2 %v1565_v0, %s1465_s23  ;;  %574 = vrot.lane.b32.xlu1 %v1568_v1, %s1465_s23 }
  0x28   : > { %570 = vrot.lane.b32.xlu0 %v1571_v2, %s1465_s23 }
  0x2f   : > { %551 = vrot.lane.b32.xlu2 %v1598_v3, %s2289_s24  ;;  %614 = vrot.lane.b32.xlu1 %v1598_v3, %s1463_s21 }
  0x30   : > { %635 = vrot.lane.b32.xlu0 %v1598_v3, %s1462_s20 }
  0x37   : > { %593 = vrot.lane.b32.xlu2 %v1598_v3, %s1464_s22  ;;  %555 = vrot.lane.b32.xlu1 %v1565_v0, %s2289_s24 }
  0x38   : > { %553 = vrot.lane.b32.xlu0 %v1568_v1, %s2289_s24 }
  0x3f   : > { %534 = vrot.lane.b32.xlu2 %v1565_v0, %s1467_s25  ;;  %532 = vrot.lane.b32.xlu1 %v1568_v1, %s1467_s25 }
  0x40   : > { %530 = vrot.lane.b32.xlu0 %v1598_v3, %s1467_s25 }
  0x47   : > { %511 = vrot.lane.b32.xlu2 %v1568_v1, %s2287_s26  ;;  %509 = vrot.lane.b32.xlu1 %v1598_v3, %s2287_s26 }
  0x48   : > { %572 = vrot.lane.b32.xlu0 %v1598_v3, %s1465_s23 }
  0x4f   : > { %488 = vrot.lane.b32.xlu2 %v1568_v1, %s2285_s27  ;;  %486 = vrot.lane.b32.xlu1 %v1598_v3, %s2285_s27 }
  0x50   : > { %513 = vrot.lane.b32.xlu0 %v1565_v0, %s2287_s26 }
  0x57   : > { %528 = vrot.lane.b32.xlu2 %v1571_v2, %s1467_s25  ;;  %549 = vrot.lane.b32.xlu1 %v1571_v2, %s2289_s24 }
  0x58   : > { %490 = vrot.lane.b32.xlu0 %v1565_v0, %s2285_s27 }
  0x5f   : > { %484 = vrot.lane.b32.xlu1 %v1571_v2, %s2285_s27  ;;  %s2306_s27 = sshll.u32 %s2308_s15, 3 }
  0x60   : > { %507 = vrot.lane.b32.xlu0 %v1571_v2, %s2287_s26 }
  0x69   : > { %v1640_v4 = vpop.permute.xlu2 %616 }
  0x71   : > { %v619_v6 = vpop.permute.xlu2 %618 }
  0x72   : > { %v621_v22 = vsel %vm620_vm1, %v1640_v4, %v619_v6 }
  0x73   : > { %v631_v27 = vmul.f32 %v627_v21, %v621_v22 }
  0x79   : > { %v598_v10 = vpop.permute.xlu2 %597 }
  0x81   : > { %v640_v9 = vpop.permute.xlu1 %639  ;;  %v577_v25 = vpop.permute.xlu2 %576 }
  0x82   : > { %v634_v11 = vpop.permute.xlu0 %633 }
  0x83   : > { %v645_v12 = vsel %vm641_vm0, %v640_v9, %v634_v11 }
  0x84   : > { %v653_v13 = vmul.f32 %v1648_v8, %v645_v12 }
  0x86   : > { %731 = vmatpush.msra.mxu3 %v653_v13 }
  0x89   : > { %v613_v18 = vpop.permute.xlu1 %612  ;;  %v1694_v36 = vpop.permute.xlu2 %551 }
  0x8a   : > { %v624_v19 = vsel %vm620_vm1, %v619_v6, %v613_v18  ;;  %v638_v20 = vpop.permute.xlu0 %637 }
  0x8b   : > { %v642_v23 = vsel %vm641_vm0, %v638_v20, %v640_v9  ;;  %v632_v24 = vmul.f32 %v628_v16, %v624_v19 }
  0x8c   : > { %v652_v26 = vmul.f32 %v1668_v17, %v642_v23 }
  0x8d   : > { %732 = vmatpush.msra.mxu3 %v632_v24  ;;  %v544_v24 = vperm.slane %v1656_v14, 2 }
  0x8e   : > { %711 = vmatpush.msra.mxu2 %v652_v26 }
  0x90   : > { %712 = vmatpush.msra.mxu2 %v631_v27 }
  0x91   : > { %v596_v30 = vpop.permute.xlu1 %595  ;;  %v594_v45 = vpop.permute.xlu2 %593 }
  0x92   : > { %v600_v31 = vsel %vm599_vm2, %v596_v30, %v598_v10  ;;  %v592_v32 = vpop.permute.xlu0 %591  ;;  %v601_v62 = vsel %vm599_vm2, %v594_v45, %v596_v30 }
  0x93   : > { %v603_v33 = vsel %vm599_vm2, %v598_v10, %v592_v32  ;;  %v610_v34 = vmul.f32 %v606_v28, %v600_v31  ;;  %v602_v63 = vsel %vm599_vm2, %v592_v32, %v594_v45  ;;  %v609_v9 = vmul.f32 %v605_v61, %v601_v62 }
  0x94   : > { %v611_v35 = vmul.f32 %v607_v29, %v603_v33  ;;  %v608_v6 = vmul.f32 %v604_v60, %v602_v63  ;;  %v564_v10 = vperm.slane %v1661_v15, 3 }
  0x95   : > { %713 = vmatpush.msra.mxu2 %v610_v34 }
  0x96   : > { %733 = vmatpush.msra.mxu3 %v611_v35  ;;  %v522_v35 = vperm.slane %v1661_v15, 1 }
  0x99   : > { %v1699_v39 = vpop.permute.xlu1 %574  ;;  %v1767_v13 = vpop.permute.xlu2 %534 }
  0x9a   : > { %v579_v40 = vsel %vm578_vm3, %v1699_v39, %v577_v25  ;;  %v1704_v41 = vpop.permute.xlu0 %570 }
  0x9b   : > { %v582_v42 = vsel %vm578_vm3, %v577_v25, %v1704_v41  ;;  %v589_v43 = vmul.f32 %v585_v37, %v579_v40  ;;  %v543_v25 = vperm.slane %v1661_v15, 2  ;;  %v583_v40 = vperm.slane %v1728_v49, 5 }
  0x9c   : > { %v590_v44 = vmul.f32 %v586_v38, %v582_v42  ;;  %v584_v42 = vperm.slane %v1733_v50, 5 }
  0x9d   : > { %714 = vmatpush.msra.mxu2 %v589_v43 }
  0x9e   : > { %734 = vmatpush.msra.mxu3 %v590_v44  ;;  %v654_v44 = vld [vmem:[%s2272_s3] sm:$0xff] }
  0x9f   : > { %715 = vmatpush.msra.mxu2 %v1568_v1 }
  0xa0   : > { %735 = vmatpush.msra.mxu3 %v1565_v0 }
  0xa1   : > { %v615_v48 = vpop.permute.xlu1 %614  ;;  %v512_v33 = vpop.permute.xlu2 %511 }
  0xa2   : > { %v636_v51 = vpop.permute.xlu0 %635  ;;  %v622_v54 = vsel %vm620_vm1, %v615_v48, %v1640_v4  ;;  %v623_v55 = vsel %vm620_vm1, %v613_v18, %v615_v48 }
  0xa3   : > { %v644_v56 = vsel %vm641_vm0, %v634_v11, %v636_v51  ;;  %v643_v57 = vsel %vm641_vm0, %v636_v51, %v638_v20  ;;  %v629_v4 = vmul.f32 %v625_v52, %v623_v55  ;;  %v630_v5 = vmul.f32 %v626_v53, %v622_v54 }
  0xa4   : > { %v650_v58 = vmul.f32 %v1717_v46, %v644_v56  ;;  %v651_v59 = vmul.f32 %v1722_v47, %v643_v57  ;;  %v565_v11 = vperm.slane %v1656_v14, 3  ;;  %v1470_v51 = vmov 0  }
  0xa5   : > { %1435 = vset.pattern.permute.xlu2 %v1470_v51  ;;  %1436 = vset.pattern.permute.xlu0 %v1470_v51  ;;  %v2294_v51 = vperm.slane %v1728_v49, 1 }
  0xa6   : > { %671 = vmatpush.msra.mxu0 %v650_v58  ;;  %691 = vmatpush.msra.mxu1 %v651_v59 }
  0xa7   : > { %657 = vperm.xlu2 %1435, %v654_v44  }
  0xa8   : > { %672 = vmatpush.msra.mxu0 %v629_v4  ;;  %692 = vmatpush.msra.mxu1 %v630_v5 }
  0xa9   : > { %v1765_v12 = vpop.permute.xlu1 %555  ;;  %v489_v59 = vpop.permute.xlu2 %488 }
  0xaa   : > { %673 = vmatpush.msra.mxu0 %v608_v6  ;;  %693 = vmatpush.msra.mxu1 %v609_v9  ;;  %v554_v18 = vpop.permute.xlu0 %553  ;;  %v483_v9 = vld [vmem:[%s2271_s2] sm:$0xff] }
  0xab   : > { %v558_v19 = vsel %vm557_vm4, %v554_v18, %v1765_v12  ;;  %v559_v20 = vsel %vm557_vm4, %v1694_v36, %v554_v18  ;;  %v562_v18 = vperm.slane %v1728_v49, 3 }
  0xac   : > { %v568_v22 = vmul.f32 %v564_v10, %v559_v20  ;;  %v569_v23 = vmul.f32 %v565_v11, %v558_v19  ;;  %v563_v19 = vperm.slane %v1733_v50, 3 }
  0xae   : > { %716 = vmatpush.msra.mxu2 %v568_v22  ;;  %736 = vmatpush.msra.mxu3 %v569_v23  ;;  %v502_v22 = vperm.slane %v1656_v14, 0 }
  0xb1   : > { %v533_v26 = vpop.permute.xlu1 %532  ;;  %v529_v20 = vpop.permute.xlu2 %528 }
  0xb2   : > { %v537_v27 = vsel %vm536_vm5, %v533_v26, %v1767_v13  ;;  %v531_v30 = vpop.permute.xlu0 %530 }
  0xb3   : > { %v538_v31 = vsel %vm536_vm5, %v531_v30, %v533_v26  ;;  %v548_v32 = vmul.f32 %v544_v24, %v537_v27  ;;  %v2296_v26 = vperm.slane %v1728_v49, 2  ;;  %v540_v27 = vsel %vm536_vm5, %v1767_v13, %v529_v20 }
  0xb4   : > { %v547_v34 = vmul.f32 %v543_v25, %v538_v31  ;;  %v539_v44 = vsel %vm536_vm5, %v529_v20, %v531_v30 }
  0xb5   : > { %737 = vmatpush.msra.mxu3 %v548_v32 }
  0xb6   : > { %717 = vmatpush.msra.mxu2 %v547_v34  ;;  %v2295_v34 = vperm.slane %v1733_v50, 2 }
  0xb8   : > { %v546_v30 = vmul.f32 %v2295_v34, %v539_v44 }
  0xb9   : > { %v1795_v43 = vpop.permute.xlu1 %509 }
  0xba   : > { %v517_v45 = vsel %vm515_vm6, %v1795_v43, %v512_v33  ;;  %v573_v48 = vpop.permute.xlu0 %572 }
  0xbb   : > { %v580_v54 = vsel %vm578_vm3, %v573_v48, %v1699_v39  ;;  %v581_v55 = vsel %vm578_vm3, %v1704_v41, %v573_v48  ;;  %v526_v56 = vmul.f32 %v522_v35, %v517_v45  ;;  %v501_v39 = vperm.slane %v1661_v15, 0 }
  0xbc   : > { %v587_v57 = vmul.f32 %v583_v40, %v581_v55  ;;  %v588_v58 = vmul.f32 %v584_v42, %v580_v54  ;;  %v523_v41 = vperm.slane %v1656_v14, 1  ;;  %v2293_v54 = vperm.slane %v1733_v50, 1 }
  0xbd   : > { %718 = vmatpush.msra.mxu2 %v526_v56 }
  0xbe   : > { %674 = vmatpush.msra.mxu0 %v587_v57  ;;  %694 = vmatpush.msra.mxu1 %v588_v58  ;;  %v2292_v57 = vperm.slane %v1728_v49, 0  ;;  %v2291_v58 = vperm.slane %v1733_v50, 0 }
  0xc0   : > { %675 = vmatpush.msra.mxu0 %v1571_v2  ;;  %695 = vmatpush.msra.mxu1 %v1598_v3 }
  0xc1   : > { %v487_v62 = vpop.permute.xlu1 %486 }
  0xc2   : > { %v496_v63 = vsel %vm494_vm7, %v487_v62, %v489_v59  ;;  %v514_v4 = vpop.permute.xlu0 %513 }
  0xc3   : > { %v516_v5 = vsel %vm515_vm6, %v512_v33, %v514_v4  ;;  %v505_v6 = vmul.f32 %v501_v39, %v496_v63 }
  0xc4   : > { %v527_v2 = vmul.f32 %v523_v41, %v516_v5 }
  0xc5   : > { %719 = vmatpush.msra.mxu2 %v505_v6 }
  0xc6   : > { %738 = vmatpush.msra.mxu3 %v527_v2  ;;  %1406 = vmatmul.msk.f32.vlgmr.msra.gmra.mxu2 %vm660_vm8, %v483_v9 }
  0xc9   : > { %v550_v23 = vpop.permute.xlu1 %549 }
  0xca   : > { %v560_v31 = vsel %vm557_vm4, %v550_v23, %v1694_v36  ;;  %v561_v32 = vsel %vm557_vm4, %v1765_v12, %v550_v23  ;;  %v491_v33 = vpop.permute.xlu0 %490  ;;  %v545_v12 = vmul.f32 %v2296_v26, %v540_v27 }
  0xcb   : > { %v495_v45 = vsel %vm494_vm7, %v489_v59, %v491_v33  ;;  %v566_v13 = vmul.f32 %v562_v18, %v561_v32  ;;  %v567_v48 = vmul.f32 %v563_v19, %v560_v31 }
  0xcc   : > { %v506_v36 = vmul.f32 %v502_v22, %v495_v45 }
  0xcd   : > { %676 = vmatpush.msra.mxu0 %v566_v13  ;;  %696 = vmatpush.msra.mxu1 %v567_v48 }
  0xce   : > { %739 = vmatpush.msra.mxu3 %v506_v36 }
  0xcf   : > { %1407 = vmatmul.msk.f32.vlgmr.msra.gmra.mxu3 %vm660_vm8, %v483_v9  ;;  %677 = vmatpush.msra.mxu0 %v545_v12 }
  0xd0   : > { %697 = vmatpush.msra.mxu1 %v546_v30 }
  0xd1   : > { %v485_v55 = vpop.permute.xlu1 %484 }
  0xd2   : > { %v508_v56 = vpop.permute.xlu0 %507  ;;  %v497_v59 = vsel %vm494_vm7, %v485_v55, %v487_v62  ;;  %v498_v63 = vsel %vm494_vm7, %v491_v33, %v485_v55 }
  0xd3   : > { %v518_v5 = vsel %vm515_vm6, %v508_v56, %v1795_v43  ;;  %v519_v6 = vsel %vm515_vm6, %v514_v4, %v508_v56  ;;  %v503_v62 = vmul.f32 %v2292_v57, %v498_v63  ;;  %v504_v23 = vmul.f32 %v2291_v58, %v497_v59 }
  0xd4   : > { %v524_v2 = vmul.f32 %v2294_v51, %v519_v6  ;;  %v525_v20 = vmul.f32 %v2293_v54, %v518_v5 }
  0xd6   : > { %678 = vmatpush.msra.mxu0 %v524_v2  ;;  %698 = vmatpush.msra.mxu1 %v525_v20 }
  0xd8   : > { %679 = vmatpush.msra.mxu0 %v503_v62  ;;  %699 = vmatpush.msra.mxu1 %v504_v23 }
  0xd9   : > { %1404 = vmatmul.msk.f32.vlgmr.msra.gmra.mxu0 %vm660_vm8, %v483_v9  ;;  %1405 = vmatmul.msk.f32.vlgmr.msra.gmra.mxu1 %vm660_vm8, %v483_v9 }
 0x101   : > { %v658_v43 = vpop.permute.xlu2 %657 }
 0x149   : > { %v721_v4 = vpop.f32.mrf.mxu2 }
 0x14a   : > { %v1884_v27 = vadd.f32 %v721_v4, %v658_v43 }
 0x14c   : > { %v802_v55 = vmul.f32 %v1884_v27, %v1884_v27 }
 0x152   : > { %v741_v31 = vpop.f32.mrf.mxu3 }
 0x153   : > { %v1886_v32 = vadd.f32 %v741_v31, %v658_v43 }
 0x155   : > { %v793_v33 = vadd.f32 %v1886_v32, %v1884_v27  ;;  %v803_v56 = vmul.f32 %v1886_v32, %v1886_v32 }
 0x156   : > { %v681_v44 = vpop.f32.mrf.mxu0  ;;  %v701_v45 = vpop.f32.mrf.mxu1 }
 0x157   : > { %v1890_v13 = vadd.f32 %v681_v44, %v658_v43  ;;  %v1892_v48 = vadd.f32 %v701_v45, %v658_v43  ;;  %794 = vadd.xlane.f32.xlu1 %v793_v33  ;;  %v804_v59 = vadd.f32 %v803_v56, %v802_v55 }
 0x159   : > { %v748_v9 = vadd.f32 %v1892_v48, %v1890_v13  ;;  %v757_v36 = vmul.f32 %v1890_v13, %v1890_v13  ;;  %v758_v12 = vmul.f32 %v1892_v48, %v1892_v48 }
 0x15b   : > { %749 = vadd.xlane.f32.xlu0 %v748_v9  ;;  %v759_v30 = vadd.f32 %v758_v12, %v757_v36 }
 0x15d   : > { %760 = vadd.xlane.f32.xlu2 %v759_v30 }
 0x165   : > { %805 = vadd.xlane.f32.xlu2 %v804_v59 }
 0x1ca   : > { %v795_v63 = vpop.xlane.xlu1 %794 }
 0x1cb   : > { %v796_v5 = vrot.slane %v795_v63, 4 }
 0x1cd   : > { %v797_v6 = vadd.f32 %v796_v5, %v795_v63 }
 0x1ce   : > { %v750_v2 = vpop.xlane.xlu0 %749 }
 0x1cf   : > { %v751_v20 = vrot.slane %v750_v2, 4  ;;  %v798_v4 = vrot.slane %v797_v6, 2 }
 0x1d0   : > { %v761_v62 = vpop.xlane.xlu2 %760 }
 0x1d1   : > { %v752_v23 = vadd.f32 %v751_v20, %v750_v2  ;;  %v762_v43 = vrot.slane %v761_v62, 4  ;;  %v799_v9 = vadd.f32 %v798_v4, %v797_v6 }
 0x1d3   : > { %v753_v31 = vrot.slane %v752_v23, 2  ;;  %v763_v33 = vadd.f32 %v762_v43, %v761_v62  ;;  %v800_v56 = vrot.slane %v799_v9, 1 }
 0x1d5   : > { %v754_v44 = vadd.f32 %v753_v31, %v752_v23  ;;  %v764_v45 = vrot.slane %v763_v33, 2  ;;  %v801_v2 = vadd.f32 %v800_v56, %v799_v9 }
 0x1d7   : > { %v755_v36 = vrot.slane %v754_v44, 1  ;;  %v765_v12 = vadd.f32 %v764_v45, %v763_v33  ;;  %v813_v23 = vmul.f32 0.00048828125, %v801_v2 }
 0x1d8   : > { %v806_v30 = vpop.xlane.xlu2 %805 }
 0x1d9   : > { %v756_v58 = vadd.f32 %v755_v36, %v754_v44  ;;  %v766_v55 = vrot.slane %v765_v12, 1  ;;  %v807_v59 = vrot.slane %v806_v30, 4  ;;  %v815_v4 = vmul.f32 %v813_v23, %v813_v23 }
 0x1db   : > { %v768_v57 = vmul.f32 0.00048828125, %v756_v58  ;;  %v767_v63 = vadd.f32 %v766_v55, %v765_v12  ;;  %v808_v5 = vadd.f32 %v807_v59, %v806_v30  ;;  %v746_v59 = vld [vmem:[%s2274_s5] sm:$0xff] }
 0x1dd   : > { %v769_v54 = vmul.f32 0.00048828125, %v767_v63  ;;  %v770_v51 = vmul.f32 %v768_v57, %v768_v57  ;;  %v809_v20 = vrot.slane %v808_v5, 2  ;;  %v773_v55 = vsub.f32 %v1892_v48, %v768_v57 }
 0x1df   : > { %v771_v34 = vsub.f32 %v769_v54, %v770_v51  ;;  %v810_v26 = vadd.f32 %v809_v20, %v808_v5  ;;  %v772_v51 = vsub.f32 %v1890_v13, %v768_v57  ;;  %v745_v13 = vld [vmem:[%s2273_s4 + $0x8] sm:$0xff] }
 0x1e0   : > { %v747_v57 = vld [vmem:[%s2274_s5 + $0x8] sm:$0xff] }
 0x1e1   : > { %v774_v62 = vadd.f32 1e-05, %v771_v34  ;;  %v811_v43 = vrot.slane %v810_v26, 1 }
 0x1e3   : > { %1441 = vrsqrt.f32 %v774_v62  ;;  %v812_v6 = vadd.f32 %v811_v43, %v810_v26  ;;  %vm781_vm10 = vweird.f32 %v774_v62  ;;  %v744_v26 = vld [vmem:[%s2273_s4] sm:$0xff] }
 0x1e5   : > { %v814_v31 = vmul.f32 0.00048828125, %v812_v6 }
 0x1e7   : > { %v816_v33 = vsub.f32 %v814_v31, %v815_v4 }
 0x1e9   : > { %v1442_v44 = vpop.eup %1441  ;;  %v819_v36 = vadd.f32 1e-05, %v816_v33 }
 0x1ea   : > { %v776_v45 = vmul.f32 %v1442_v44, %v774_v62  ;;  %vm782_vm9 = vweird.f32 %v1442_v44 }
 0x1eb   : > { %1443 = vrsqrt.f32 %v819_v36  ;;  %vm783_vm11 = vmor %vm781_vm10, %vm782_vm9  ;;  %vm826_vm13 = vweird.f32 %v819_v36 }
 0x1ec   : > { %v777_v58 = vmul.f32 %v1442_v44, %v776_v45 }
 0x1ee   : > { %v778_v12 = vmul.f32 0.5, %v777_v58  ;;  %v818_v58 = vsub.f32 %v1886_v32, %v813_v23 }
 0x1f0   : > { %v779_v30 = vsub.f32 1.5, %v778_v12 }
 0x1f1   : > { %v1444_v54 = vpop.eup %1443 }
 0x1f2   : > { %v780_v9 = vmul.f32 %v1442_v44, %v779_v30  ;;  %v821_v2 = vmul.f32 %v1444_v54, %v819_v36  ;;  %vm827_vm12 = vweird.f32 %v1444_v54 }
 0x1f3   : > { %vm828_vm14 = vmor %vm826_vm13, %vm827_vm12 }
 0x1f4   : > { %v784_v34 = vsel %vm783_vm11, %v1442_v44, %v780_v9  ;;  %v822_v48 = vmul.f32 %v1444_v54, %v821_v2  ;;  %v817_v9 = vsub.f32 %v1884_v27, %v813_v23 }
 0x1f5   : > { %v785_v56 = vmul.f32 %v784_v34, %v772_v51  ;;  %v786_v63 = vmul.f32 %v784_v34, %v773_v55 }
 0x1f6   : > { %v823_v4 = vmul.f32 0.5, %v822_v48 }
 0x1f7   : > { %v787_v5 = vmul.f32 %v785_v56, %v744_v26  ;;  %v788_v62 = vmul.f32 %v786_v63, %v745_v13 }
 0x1f8   : > { %v824_v33 = vsub.f32 1.5, %v823_v4 }
 0x1f9   : > { %v789_v20 = vadd.f32 %v787_v5, %v746_v59  ;;  %v790_v6 = vadd.f32 %v788_v62, %v747_v57 }
 0x1fa   : > { %v825_v44 = vmul.f32 %v1444_v54, %v824_v33 }
 0x1fb   : > { %v1915_v43 = vmax.f32 %v789_v20, 0.0  ;;  %v1926_v31 = vmax.f32 %v790_v6, 0.0 }
 0x1fc   : > { %v829_v45 = vsel %vm828_vm14, %v1444_v54, %v825_v44 }
 0x1fd   : > { %903 = vrot.lane.b32.xlu1 %v1915_v43, %s1465_s23  ;;  %919 = vrot.lane.b32.xlu2 %v1915_v43, %s1464_s22  ;;  %v831_v12 = vmul.f32 %v829_v45, %v818_v58  ;;  %v830_v32 = vmul.f32 %v829_v45, %v817_v9 }
 0x1fe   : > { %951 = vrot.lane.b32.xlu0 %v1915_v43, %s1462_s20 }
 0x1ff   : > { %v833_v30 = vmul.f32 %v831_v12, %v745_v13  ;;  %v832_v51 = vmul.f32 %v830_v32, %v744_v26  ;;  %v1147_v26 = vld [vmem:[%s2280_s11] sm:$0xff] }
 0x201   : > { %v835_v36 = vadd.f32 %v833_v30, %v747_v57  ;;  %v834_v27 = vadd.f32 %v832_v51, %v746_v59 }
 0x203   : > { %v1948_v34 = vmax.f32 %v835_v36, 0.0  ;;  %v1956_v23 = vmax.f32 %v834_v27, 0.0 }
 0x205   : > { %937 = vrot.lane.b32.xlu1 %v1926_v31, %s1463_s21  ;;  %953 = vrot.lane.b32.xlu2 %v1926_v31, %s1462_s20 }
 0x206   : > { %935 = vrot.lane.b32.xlu0 %v1915_v43, %s1463_s21 }
 0x20d   : > { %873 = vrot.lane.b32.xlu1 %v1926_v31, %s1467_s25  ;;  %889 = vrot.lane.b32.xlu2 %v1926_v31, %s2297_s17 }
 0x20e   : > { %921 = vrot.lane.b32.xlu0 %v1926_v31, %s1464_s22 }
 0x215   : > { %857 = vrot.lane.b32.xlu1 %v1926_v31, %s2298_s18  ;;  %905 = vrot.lane.b32.xlu2 %v1926_v31, %s1465_s23 }
 0x216   : > { %841 = vrot.lane.b32.xlu0 %v1926_v31, %s2299_s28 }
 0x21d   : > { %887 = vrot.lane.b32.xlu1 %v1915_v43, %s2297_s17  ;;  %957 = vrot.lane.b32.xlu2 %v1948_v34, %s1462_s20 }
 0x21e   : > { %941 = vrot.lane.b32.xlu0 %v1948_v34, %s1463_s21 }
 0x225   : > { %955 = vrot.lane.b32.xlu1 %v1956_v23, %s1462_s20  ;;  %909 = vrot.lane.b32.xlu2 %v1948_v34, %s1465_s23 }
 0x226   : > { %925 = vrot.lane.b32.xlu0 %v1948_v34, %s1464_s22 }
 0x22d   : > { %939 = vrot.lane.b32.xlu1 %v1956_v23, %s1463_s21  ;;  %877 = vrot.lane.b32.xlu2 %v1948_v34, %s1467_s25 }
 0x22e   : > { %907 = vrot.lane.b32.xlu0 %v1956_v23, %s1465_s23 }
 0x235   : > { %923 = vrot.lane.b32.xlu1 %v1956_v23, %s1464_s22  ;;  %861 = vrot.lane.b32.xlu2 %v1948_v34, %s2298_s18 }
 0x236   : > { %893 = vrot.lane.b32.xlu0 %v1948_v34, %s2297_s17 }
 0x23d   : > { %891 = vrot.lane.b32.xlu1 %v1956_v23, %s2297_s17  ;;  %843 = vrot.lane.b32.xlu2 %v1956_v23, %s2299_s28 }
 0x23e   : > { %875 = vrot.lane.b32.xlu0 %v1956_v23, %s1467_s25 }
 0x245   : > { %845 = vrot.lane.b32.xlu1 %v1948_v34, %s2299_s28  ;;  %855 = vrot.lane.b32.xlu2 %v1915_v43, %s2298_s18 }
 0x246   : > { %859 = vrot.lane.b32.xlu0 %v1956_v23, %s2298_s18 }
 0x24d   : > { %839 = vrot.lane.b32.xlu1 %v1915_v43, %s2299_s28  ;;  %1150 = vperm.xlu2 %1435, %v1147_v26   ;;  %s469_s28 = scalar_lea.vmem %s2283_s14, %s2306_s27 }
 0x24e   : > { %871 = vrot.lane.b32.xlu0 %v1915_v43, %s1467_s25 }
 0x257   : > { %v920_v54 = vpop.permute.xlu2 %919 }
 0x25f   : > { %v954_v55 = vpop.permute.xlu2 %953 }
 0x267   : > { %v1995_v56 = vpop.permute.xlu2 %889 }
 0x26f   : > { %v904_v59 = vpop.permute.xlu1 %903  ;;  %v906_v63 = vpop.permute.xlu2 %905 }
 0x270   : > { %v952_v5 = vpop.permute.xlu0 %951  ;;  %v913_v45 = vsel %vm578_vm3, %v904_v59, %v906_v63 }
 0x271   : > { %v961_v13 = vsel %vm641_vm0, %v952_v5, %v954_v55 }
 0x272   : > { %v963_v2 = vmul.f32 %v1717_v46, %v961_v13 }
 0x274   : > { %983 = vmatpush.msrb.mxu0 %v963_v2 }
 0x277   : > { %v938_v20 = vpop.permute.xlu1 %937  ;;  %v958_v62 = vpop.permute.xlu2 %957 }
 0x278   : > { %v962_v57 = vsel %vm641_vm0, %v958_v62, %v952_v5  ;;  %v936_v48 = vpop.permute.xlu0 %935 }
 0x279   : > { %v945_v6 = vsel %vm620_vm1, %v936_v48, %v938_v20  ;;  %v966_v4 = vmul.f32 %v1648_v8, %v962_v57  ;;  %v915_v8 = vmul.f32 %v913_v45, %v583_v40 }
 0x27a   : > { %v947_v33 = vmul.f32 %v945_v6, %v625_v52 }
 0x27b   : > { %1043 = vmatpush.msrb.mxu3 %v966_v4 }
 0x27c   : > { %984 = vmatpush.msrb.mxu0 %v947_v33 }
 0x27f   : > { %v2007_v44 = vpop.permute.xlu1 %873 }
 0x280   : > { %v922_v46 = vpop.permute.xlu0 %921 }
 0x281   : > { %v929_v58 = vsel %vm599_vm2, %v920_v54, %v922_v46 }
 0x282   : > { %v931_v12 = vmul.f32 %v929_v58, %v604_v60  ;;  %v910_v60 = vpop.permute.xlu2 %909 }
 0x283   : > { %v914_v5 = vsel %vm578_vm3, %v910_v60, %v904_v59 }
 0x284   : > { %985 = vmatpush.msrb.mxu0 %v931_v12 }
 0x286   : > { %986 = vmatpush.msrb.mxu0 %v915_v8 }
 0x287   : > { %v2017_v52 = vpop.permute.xlu1 %857 }
 0x288   : > { %987 = vmatpush.msrb.mxu0 %v1915_v43  ;;  %v2020_v30 = vpop.permute.xlu0 %841 }
 0x28f   : > { %v888_v9 = vpop.permute.xlu1 %887 }
 0x290   : > { %v942_v32 = vpop.permute.xlu0 %941  ;;  %v897_v8 = vsel %vm557_vm4, %v888_v9, %v1995_v56 }
 0x291   : > { %v946_v36 = vsel %vm620_vm1, %v942_v32, %v936_v48  ;;  %v2040_v48 = vpop.permute.xlu2 %877 }
 0x292   : > { %v950_v51 = vmul.f32 %v946_v36, %v628_v16 }
 0x294   : > { %1044 = vmatpush.msrb.mxu3 %v950_v51 }
 0x297   : > { %v956_v27 = vpop.permute.xlu1 %955 }
 0x298   : > { %v959_v40 = vsel %vm641_vm0, %v956_v27, %v958_v62  ;;  %v960_v26 = vsel %vm641_vm0, %v954_v55, %v956_v27  ;;  %v926_v43 = vpop.permute.xlu0 %925  ;;  %v918_v55 = vmul.f32 %v914_v5, %v586_v38 }
 0x299   : > { %v930_v13 = vsel %vm599_vm2, %v926_v43, %v920_v54  ;;  %v964_v2 = vmul.f32 %v1722_v47, %v960_v26  ;;  %v965_v16 = vmul.f32 %v1668_v17, %v959_v40  ;;  %v862_v58 = vpop.permute.xlu2 %861 }
 0x29a   : > { %v934_v57 = vmul.f32 %v930_v13, %v607_v29  ;;  %v838_v13 = vld [vmem:[%s2275_s6] sm:$0xff] }
 0x29b   : > { %1003 = vmatpush.msrb.mxu1 %v964_v2  ;;  %1023 = vmatpush.msrb.mxu2 %v965_v16  ;;  %v2300_v16 = vperm.slane %v1728_v49, 2 }
 0x29c   : > { %1045 = vmatpush.msrb.mxu3 %v934_v57 }
 0x29e   : > { %1046 = vmatpush.msrb.mxu3 %v918_v55 }
 0x29f   : > { %v940_v62 = vpop.permute.xlu1 %939 }
 0x2a0   : > { %v943_v54 = vsel %vm620_vm1, %v940_v62, %v942_v32  ;;  %v944_v47 = vsel %vm620_vm1, %v938_v20, %v940_v62  ;;  %1047 = vmatpush.msrb.mxu3 %v1948_v34  ;;  %v908_v17 = vpop.permute.xlu0 %907 }
 0x2a1   : > { %v948_v29 = vmul.f32 %v944_v47, %v626_v53  ;;  %v949_v59 = vmul.f32 %v943_v54, %v627_v21  ;;  %v911_v6 = vsel %vm578_vm3, %v908_v17, %v910_v60  ;;  %v912_v4 = vsel %vm578_vm3, %v906_v63, %v908_v17  ;;  %v844_v51 = vpop.permute.xlu2 %843  ;;  %v1146_v47 = vld [vmem:[%s2279_s10] sm:$0xff] }
 0x2a2   : > { %v916_v12 = vmul.f32 %v912_v4, %v584_v42  ;;  %v2305_v17 = vperm.slane %v1733_v50, 0 }
 0x2a3   : > { %1004 = vmatpush.msrb.mxu1 %v948_v29  ;;  %1024 = vmatpush.msrb.mxu2 %v949_v59  ;;  %v1453_v59 = vld [vmem:[%s1562_s19] sm:$0xff] }
 0x2a7   : > { %v924_v38 = vpop.permute.xlu1 %923 }
 0x2a8   : > { %v927_v20 = vsel %vm599_vm2, %v924_v38, %v926_v43  ;;  %v928_v34 = vsel %vm599_vm2, %v922_v46, %v924_v38  ;;  %v894_v33 = vpop.permute.xlu0 %893  ;;  %v917_v46 = vmul.f32 %v911_v6, %v585_v37 }
 0x2a9   : > { %v898_v53 = vsel %vm557_vm4, %v894_v33, %v888_v9  ;;  %v932_v21 = vmul.f32 %v928_v34, %v605_v61  ;;  %v933_v45 = vmul.f32 %v927_v20, %v606_v28  ;;  %v900_v61 = vmul.f32 %v897_v8, %v563_v19  ;;  %v856_v2 = vpop.permute.xlu2 %855 }
 0x2aa   : > { %v899_v63 = vmul.f32 %v898_v53, %v562_v18  ;;  %v865_v14 = vsel %vm515_vm6, %v856_v2, %v2017_v52  ;;  %v866_v15 = vsel %vm515_vm6, %v862_v58, %v856_v2 }
 0x2ab   : > { %1005 = vmatpush.msrb.mxu1 %v932_v21  ;;  %1025 = vmatpush.msrb.mxu2 %v933_v45 }
 0x2ac   : > { %988 = vmatpush.msrb.mxu0 %v899_v63 }
 0x2ad   : > { %1006 = vmatpush.msrb.mxu1 %v916_v12  ;;  %1026 = vmatpush.msrb.mxu2 %v917_v46 }
 0x2af   : > { %v892_v28 = vpop.permute.xlu1 %891  ;;  %1007 = vmatpush.msrb.mxu1 %v1926_v31  ;;  %1027 = vmatpush.msrb.mxu2 %v1956_v23 }
 0x2b0   : > { %v895_v42 = vsel %vm557_vm4, %v892_v28, %v894_v33  ;;  %v896_v37 = vsel %vm557_vm4, %v1995_v56, %v892_v28  ;;  %v876_v18 = vpop.permute.xlu0 %875  ;;  %v967_v56 = vld [vmem:[%s2276_s7] sm:$0xff] }
 0x2b1   : > { %v879_v9 = vsel %vm536_vm5, %v876_v18, %v2040_v48  ;;  %v880_v31 = vsel %vm536_vm5, %v2007_v44, %v876_v18  ;;  %1008 = vmatpush.msrb.mxu1 %v900_v61  ;;  %v901_v19 = vmul.f32 %v896_v37, %v564_v10  ;;  %v902_v23 = vmul.f32 %v895_v42, %v565_v11  ;;  %v1151_v63 = vpop.permute.xlu2 %1150 }
 0x2b2   : > { %970 = vperm.xlu0 %1436, %v967_v56   ;;  %v885_v32 = vmul.f32 %v880_v31, %v543_v25  ;;  %v886_v36 = vmul.f32 %v879_v9, %v544_v24  ;;  %v848_v11 = vsel %vm494_vm7, %v2020_v30, %v844_v51 }
 0x2b3   : > { %1028 = vmatpush.msrb.mxu2 %v901_v19  ;;  %1048 = vmatpush.msrb.mxu3 %v902_v23  ;;  %v853_v43 = vmul.f32 %v848_v11, %v501_v39 }
 0x2b5   : > { %1029 = vmatpush.msrb.mxu2 %v885_v32  ;;  %1049 = vmatpush.msrb.mxu3 %v886_v36 }
 0x2b7   : > { %v846_v10 = vpop.permute.xlu1 %845 }
 0x2b8   : > { %v860_v60 = vpop.permute.xlu0 %859  ;;  %v847_v27 = vsel %vm494_vm7, %v844_v51, %v846_v10 }
 0x2b9   : > { %v863_v40 = vsel %vm515_vm6, %v860_v60, %v862_v58  ;;  %v864_v25 = vsel %vm515_vm6, %v2017_v52, %v860_v60  ;;  %v854_v5 = vmul.f32 %v847_v27, %v502_v22 }
 0x2ba   : > { %v869_v24 = vmul.f32 %v864_v25, %v522_v35  ;;  %v870_v26 = vmul.f32 %v863_v40, %v523_v41 }
 0x2bc   : > { %1030 = vmatpush.msrb.mxu2 %v869_v24  ;;  %1050 = vmatpush.msrb.mxu3 %v870_v26 }
 0x2be   : > { %1031 = vmatpush.msrb.mxu2 %v853_v43  ;;  %1051 = vmatpush.msrb.mxu3 %v854_v5 }
 0x2bf   : > { %1410 = vmatmul.msk.f32.vlgmr.msrb.gmra.mxu2 %vm660_vm8, %v838_v13  ;;  %1411 = vmatmul.msk.f32.vlgmr.msrb.gmra.mxu3 %vm660_vm8, %v838_v13  ;;  %v840_v35 = vpop.permute.xlu1 %839 }
 0x2c0   : > { %v872_v41 = vpop.permute.xlu0 %871  ;;  %1212 = vmatpush.msra.mxu2 %v1568_v1  ;;  %1232 = vmatpush.msra.mxu3 %v1565_v0  ;;  %v2301_v0 = vperm.slane %v1733_v50, 2  ;;  %v849_v52 = vsel %vm494_vm7, %v840_v35, %v2020_v30  ;;  %v850_v55 = vsel %vm494_vm7, %v846_v10, %v840_v35  ;;  %v2304_v30 = vperm.slane %v1728_v49, 0 }
 0x2c1   : > { %v881_v39 = vsel %vm536_vm5, %v872_v41, %v2007_v44  ;;  %v882_v22 = vsel %vm536_vm5, %v2040_v48, %v872_v41  ;;  %v2302_v44 = vperm.slane %v1728_v49, 1  ;;  %v2303_v48 = vperm.slane %v1733_v50, 1 }
 0x2c2   : > { %v883_v1 = vmul.f32 %v882_v22, %v2300_v16  ;;  %v884_v57 = vmul.f32 %v881_v39, %v2301_v0  ;;  %v851_v7 = vmul.f32 %v850_v55, %v2304_v30  ;;  %v852_v29 = vmul.f32 %v849_v52, %v2305_v17 }
 0x2c3   : > { %v867_v62 = vmul.f32 %v866_v15, %v2302_v44  ;;  %v868_v54 = vmul.f32 %v865_v14, %v2303_v48 }
 0x2c4   : > { %989 = vmatpush.msrb.mxu0 %v883_v1  ;;  %1009 = vmatpush.msrb.mxu1 %v884_v57 }
 0x2c6   : > { %990 = vmatpush.msrb.mxu0 %v867_v62  ;;  %1010 = vmatpush.msrb.mxu1 %v868_v54 }
 0x2c7   : > { %1414 = vmatmul.msk.f32.vlgmr.msra.gmra.mxu2 %vm1153_vm15, %v1146_v47  ;;  %1415 = vmatmul.msk.f32.vlgmr.msra.gmra.mxu3 %vm1153_vm15, %v1146_v47 }
 0x2c8   : > { %991 = vmatpush.msrb.mxu0 %v851_v7  ;;  %1011 = vmatpush.msrb.mxu1 %v852_v29 }
 0x2c9   : > { %1408 = vmatmul.msk.f32.vlgmr.msrb.gmra.mxu0 %vm660_vm8, %v838_v13  ;;  %1409 = vmatmul.msk.f32.vlgmr.msrb.gmra.mxu1 %vm660_vm8, %v838_v13 }
 0x2ca   : > { %1172 = vmatpush.msra.mxu0 %v1453_v59  ;;  %1192 = vmatpush.msra.mxu1 %v1598_v3 }
 0x2d1   : > { %1412 = vmatmul.msk.f32.vlgmr.msra.gmra.mxu0 %vm1153_vm15, %v1146_v47  ;;  %1413 = vmatmul.msk.f32.vlgmr.msra.gmra.mxu1 %vm1153_vm15, %v1146_v47 }
 0x324   : > { %v971_v38 = vpop.permute.xlu0 %970 }
 0x342   : > { %v1033_v20 = vpop.f32.mrf.mxu2  ;;  %v1053_v34 = vpop.f32.mrf.mxu3 }
 0x343   : > { %v2170_v21 = vadd.f32 %v1033_v20, %v971_v38  ;;  %v2172_v45 = vadd.f32 %v1053_v34, %v971_v38 }
 0x345   : > { %v1112_v61 = vmul.f32 %v2170_v21, %v2170_v21  ;;  %v1113_v42 = vmul.f32 %v2172_v45, %v2172_v45  ;;  %v1103_v18 = vadd.f32 %v2172_v45, %v2170_v21 }
 0x346   : > { %v993_v49 = vpop.f32.mrf.mxu0  ;;  %v1013_v6 = vpop.f32.mrf.mxu1 }
 0x347   : > { %v2160_v4 = vadd.f32 %v993_v49, %v971_v38  ;;  %v2162_v50 = vadd.f32 %v1013_v6, %v971_v38  ;;  %v1114_v19 = vadd.f32 %v1113_v42, %v1112_v61 }
 0x349   : > { %v1060_v33 = vadd.f32 %v2162_v50, %v2160_v4  ;;  %v1069_v53 = vmul.f32 %v2160_v4, %v2160_v4  ;;  %v1070_v3 = vmul.f32 %v2162_v50, %v2162_v50 }
 0x34a   : > { %v1214_v9 = vpop.f32.mrf.mxu2  ;;  %v1234_v31 = vpop.f32.mrf.mxu3 }
 0x34b   : > { %1061 = vadd.xlane.f32.xlu1 %v1060_v33  ;;  %v1071_v58 = vadd.f32 %v1070_v3, %v1069_v53  ;;  %v2186_v23 = vadd.f32 %v1214_v9, %v1151_v63  ;;  %v2188_v56 = vadd.f32 %v1234_v31, %v1151_v63 }
 0x34d   : > { %1072 = vadd.xlane.f32.xlu0 %v1071_v58  ;;  %v1284_v10 = vadd.f32 %v2188_v56, %v2186_v23  ;;  %v1293_v60 = vmul.f32 %v2186_v23, %v2186_v23  ;;  %v1294_v11 = vmul.f32 %v2188_v56, %v2188_v56 }
 0x34e   : > { %v1174_v12 = vpop.f32.mrf.mxu0  ;;  %v1194_v46 = vpop.f32.mrf.mxu1 }
 0x34f   : > { %v2174_v8 = vadd.f32 %v1174_v12, %v1151_v63  ;;  %v2176_v28 = vadd.f32 %v1194_v46, %v1151_v63  ;;  %v1295_v27 = vadd.f32 %v1294_v11, %v1293_v60 }
 0x351   : > { %v1241_v37 = vadd.f32 %v2176_v28, %v2174_v8  ;;  %v1250_v32 = vmul.f32 %v2174_v8, %v2174_v8  ;;  %v1251_v36 = vmul.f32 %v2176_v28, %v2176_v28 }
 0x353   : > { %1242 = vadd.xlane.f32.xlu2 %v1241_v37  ;;  %1104 = vadd.xlane.f32.xlu1 %v1103_v18  ;;  %v1252_v51 = vadd.f32 %v1251_v36, %v1250_v32 }
 0x355   : > { %1115 = vadd.xlane.f32.xlu0 %v1114_v19 }
 0x35b   : > { %1253 = vadd.xlane.f32.xlu2 %v1252_v51  ;;  %1285 = vadd.xlane.f32.xlu1 %v1284_v10 }
 0x363   : > { %1296 = vadd.xlane.f32.xlu2 %v1295_v27 }
 0x3be   : > { %v1062_v40 = vpop.xlane.xlu1 %1061 }
 0x3bf   : > { %v1063_v25 = vrot.slane %v1062_v40, 4 }
 0x3c0   : > { %v1073_v24 = vpop.xlane.xlu0 %1072 }
 0x3c1   : > { %v1064_v26 = vadd.f32 %v1063_v25, %v1062_v40  ;;  %v1074_v43 = vrot.slane %v1073_v24, 4 }
 0x3c3   : > { %v1065_v5 = vrot.slane %v1064_v26, 2  ;;  %v1075_v13 = vadd.f32 %v1074_v43, %v1073_v24 }
 0x3c5   : > { %v1066_v2 = vadd.f32 %v1065_v5, %v1064_v26  ;;  %v1076_v35 = vrot.slane %v1075_v13, 2 }
 0x3c6   : > { %v1243_v41 = vpop.xlane.xlu2 %1242  ;;  %v1105_v14 = vpop.xlane.xlu1 %1104 }
 0x3c7   : > { %v1067_v15 = vrot.slane %v1066_v2, 1  ;;  %v1077_v39 = vadd.f32 %v1076_v35, %v1075_v13  ;;  %v1244_v22 = vrot.slane %v1243_v41, 4  ;;  %v1106_v16 = vrot.slane %v1105_v14, 4 }
 0x3c8   : > { %v1116_v1 = vpop.xlane.xlu0 %1115 }
 0x3c9   : > { %v1068_v0 = vadd.f32 %v1067_v15, %v1066_v2  ;;  %v1078_v57 = vrot.slane %v1077_v39, 1  ;;  %v1245_v52 = vadd.f32 %v1244_v22, %v1243_v41  ;;  %v1107_v55 = vadd.f32 %v1106_v16, %v1105_v14 }
 0x3ca   : > { %v1117_v44 = vrot.slane %v1116_v1, 4 }
 0x3cb   : > { %v2200_v62 = vmul.f32 0.00048828125, %v1068_v0  ;;  %v1079_v48 = vadd.f32 %v1078_v57, %v1077_v39  ;;  %v1246_v54 = vrot.slane %v1245_v52, 2  ;;  %v1108_v47 = vrot.slane %v1107_v55, 2 }
 0x3cc   : > { %v1118_v30 = vadd.f32 %v1117_v44, %v1116_v1 }
 0x3cd   : > { %v1081_v7 = vmul.f32 0.00048828125, %v1079_v48  ;;  %v1082_v17 = vmul.f32 %v2200_v62, %v2200_v62  ;;  %v1247_v29 = vadd.f32 %v1246_v54, %v1245_v52  ;;  %v1109_v59 = vadd.f32 %v1108_v47, %v1107_v55 }
 0x3ce   : > { %v1119_v38 = vrot.slane %v1118_v30, 2  ;;  %v1254_v49 = vpop.xlane.xlu2 %1253  ;;  %v1286_v6 = vpop.xlane.xlu1 %1285 }
 0x3cf   : > { %v1083_v20 = vsub.f32 %v1081_v7, %v1082_v17  ;;  %v1255_v34 = vrot.slane %v1254_v49, 4  ;;  %v1287_v33 = vrot.slane %v1286_v6, 4  ;;  %v1248_v53 = vrot.slane %v1247_v29, 1 }
 0x3d0   : > { %v1110_v3 = vrot.slane %v1109_v59, 1  ;;  %v1120_v58 = vadd.f32 %v1119_v38, %v1118_v30 }
 0x3d1   : > { %v1086_v63 = vadd.f32 1e-05, %v1083_v20  ;;  %v1256_v12 = vadd.f32 %v1255_v34, %v1254_v49  ;;  %v1288_v46 = vadd.f32 %v1287_v33, %v1286_v6  ;;  %v1249_v37 = vadd.f32 %v1248_v53, %v1247_v29 }
 0x3d2   : > { %v1111_v61 = vadd.f32 %v1110_v3, %v1109_v59  ;;  %v1121_v42 = vrot.slane %v1120_v58, 1  ;;  %v1084_v53 = vsub.f32 %v2160_v4, %v2200_v62  ;;  %v1085_v3 = vsub.f32 %v2162_v50, %v2200_v62 }
 0x3d3   : > { %1445 = vrsqrt.f32 %v1086_v63  ;;  %v1257_v18 = vrot.slane %v1256_v12, 2  ;;  %v1289_v9 = vrot.slane %v1288_v46, 2  ;;  %v2206_v10 = vmul.f32 0.00048828125, %v1249_v37  ;;  %v1057_v37 = vld [vmem:[%s2277_s8 + $0x8] sm:$0xff] }
 0x3d4   : > { %v2204_v31 = vmul.f32 0.00048828125, %v1111_v61  ;;  %v1122_v19 = vadd.f32 %v1121_v42, %v1120_v58  ;;  %vm1093_vm1 = vweird.f32 %v1086_v63 }
 0x3d5   : > { %v1258_v32 = vadd.f32 %v1257_v18, %v1256_v12  ;;  %v1290_v36 = vadd.f32 %v1289_v9, %v1288_v46  ;;  %v1263_v35 = vmul.f32 %v2206_v10, %v2206_v10  ;;  %v1265_v4 = vsub.f32 %v2174_v8, %v2206_v10  ;;  %v1058_v8 = vld [vmem:[%s2278_s9] sm:$0xff] }
 0x3d6   : > { %v1297_v51 = vpop.xlane.xlu2 %1296  ;;  %v1124_v60 = vmul.f32 0.00048828125, %v1122_v19  ;;  %v1125_v11 = vmul.f32 %v2204_v31, %v2204_v31  ;;  %v1266_v50 = vsub.f32 %v2176_v28, %v2206_v10 }
 0x3d7   : > { %v1259_v27 = vrot.slane %v1258_v32, 1  ;;  %v1291_v40 = vrot.slane %v1290_v36, 1  ;;  %v1298_v25 = vrot.slane %v1297_v51, 4 }
 0x3d8   : > { %v1126_v26 = vsub.f32 %v1124_v60, %v1125_v11  ;;  %v1059_v11 = vld [vmem:[%s2278_s9 + $0x8] sm:$0xff] }
 0x3d9   : > { %v1446_v24 = vpop.eup %1445  ;;  %v1260_v43 = vadd.f32 %v1259_v27, %v1258_v32  ;;  %v1299_v13 = vadd.f32 %v1298_v25, %v1297_v51  ;;  %v1292_v15 = vadd.f32 %v1291_v40, %v1290_v36  ;;  %v1237_v32 = vld [vmem:[%s2281_s12] sm:$0xff]  ;;  %v1238_v36 = vld [vmem:[%s2281_s12 + $0x8] sm:$0xff] }
 0x3da   : > { %v1088_v5 = vmul.f32 %v1446_v24, %v1086_v63  ;;  %v2210_v2 = vadd.f32 1e-05, %v1126_v26  ;;  %vm1094_vm0 = vweird.f32 %v1446_v24  ;;  %v1056_v63 = vld [vmem:[%s2277_s8] sm:$0xff]  ;;  %v1240_v40 = vld [vmem:[%s2282_s13 + $0x8] sm:$0xff] }
 0x3db   : > { %v1262_v41 = vmul.f32 0.00048828125, %v1260_v43  ;;  %v1300_v39 = vrot.slane %v1299_v13, 2  ;;  %v2215_v57 = vmul.f32 0.00048828125, %v1292_v15  ;;  %vm1095_vm2 = vmor %vm1093_vm1, %vm1094_vm0  ;;  %v1239_v27 = vld [vmem:[%s2282_s13] sm:$0xff]  ;;  %v1127_v43 = vsub.f32 %v2170_v21, %v2204_v31 }
 0x3dc   : > { %v1089_v14 = vmul.f32 %v1446_v24, %v1088_v5  ;;  %1447 = vrsqrt.f32 %v2210_v2  ;;  %vm1136_vm7 = vweird.f32 %v2210_v2  ;;  %v1128_v5 = vsub.f32 %v2172_v45, %v2204_v31 }
 0x3dd   : > { %v1264_v22 = vsub.f32 %v1262_v41, %v1263_v35  ;;  %v1301_v16 = vadd.f32 %v1300_v39, %v1299_v13  ;;  %v1306_v30 = vmul.f32 %v2215_v57, %v2215_v57  ;;  %v1308_v45 = vsub.f32 %v2186_v23, %v2215_v57 }
 0x3de   : > { %v1090_v0 = vmul.f32 0.5, %v1089_v14  ;;  %v1309_v31 = vsub.f32 %v2188_v56, %v2215_v57 }
 0x3df   : > { %v1267_v1 = vadd.f32 1e-05, %v1264_v22  ;;  %v1302_v52 = vrot.slane %v1301_v16, 1 }
 0x3e0   : > { %v1091_v48 = vsub.f32 1.5, %v1090_v0 }
 0x3e1   : > { %1449 = vrsqrt.f32 %v1267_v1  ;;  %v1303_v55 = vadd.f32 %v1302_v52, %v1301_v16  ;;  %vm1274_vm4 = vweird.f32 %v1267_v1 }
 0x3e2   : > { %v1448_v44 = vpop.eup %1447  ;;  %v1092_v59 = vmul.f32 %v1446_v24, %v1091_v48 }
 0x3e3   : > { %v1131_v54 = vmul.f32 %v1448_v44, %v2210_v2  ;;  %v1305_v47 = vmul.f32 0.00048828125, %v1303_v55  ;;  %vm1137_vm6 = vweird.f32 %v1448_v44 }
 0x3e4   : > { %v1096_v34 = vsel %vm1095_vm2, %v1446_v24, %v1092_v59  ;;  %vm1138_vm8 = vmor %vm1136_vm7, %vm1137_vm6 }
 0x3e5   : > { %v1132_v7 = vmul.f32 %v1448_v44, %v1131_v54  ;;  %v1307_v17 = vsub.f32 %v1305_v47, %v1306_v30  ;;  %v1097_v46 = vmul.f32 %v1096_v34, %v1084_v53  ;;  %v1098_v61 = vmul.f32 %v1096_v34, %v1085_v3 }
 0x3e7   : > { %v1450_v29 = vpop.eup %1449  ;;  %v1310_v49 = vadd.f32 1e-05, %v1307_v17  ;;  %v1133_v6 = vmul.f32 0.5, %v1132_v7  ;;  %v1099_v51 = vmul.f32 %v1097_v46, %v1056_v63  ;;  %v1100_v60 = vmul.f32 %v1098_v61, %v1057_v37 }
 0x3e8   : > { %v1269_v38 = vmul.f32 %v1450_v29, %v1267_v1  ;;  %vm1275_vm3 = vweird.f32 %v1450_v29 }
 0x3e9   : > { %1451 = vrsqrt.f32 %v1310_v49  ;;  %v1134_v58 = vsub.f32 1.5, %v1133_v6  ;;  %vm1276_vm5 = vmor %vm1274_vm4, %vm1275_vm3  ;;  %v1101_v35 = vadd.f32 %v1099_v51, %v1058_v8  ;;  %v1102_v41 = vadd.f32 %v1100_v60, %v1059_v11 }
 0x3ea   : > { %v1270_v20 = vmul.f32 %v1450_v29, %v1269_v38  ;;  %vm1317_vm10 = vweird.f32 %v1310_v49 }
 0x3eb   : > { %v1135_v9 = vmul.f32 %v1448_v44, %v1134_v58 }
 0x3ec   : > { %v1271_v33 = vmul.f32 0.5, %v1270_v20 }
 0x3ed   : > { %v1139_v13 = vsel %vm1138_vm8, %v1448_v44, %v1135_v9 }
 0x3ee   : > { %v1272_v12 = vsub.f32 1.5, %v1271_v33  ;;  %v1140_v22 = vmul.f32 %v1139_v13, %v1127_v43  ;;  %v1141_v16 = vmul.f32 %v1139_v13, %v1128_v5 }
 0x3ef   : > { %v1452_v42 = vpop.eup %1451 }
 0x3f0   : > { %v1273_v18 = vmul.f32 %v1450_v29, %v1272_v12  ;;  %v1312_v62 = vmul.f32 %v1452_v42, %v1310_v49  ;;  %vm1318_vm9 = vweird.f32 %v1452_v42  ;;  %v1142_v48 = vmul.f32 %v1140_v22, %v1056_v63 }
 0x3f1   : > { %vm1319_vm11 = vmor %vm1317_vm10, %vm1318_vm9  ;;  %v1143_v54 = vmul.f32 %v1141_v16, %v1057_v37 }
 0x3f2   : > { %v1277_v19 = vsel %vm1276_vm5, %v1450_v29, %v1273_v18  ;;  %v1313_v25 = vmul.f32 %v1452_v42, %v1312_v62  ;;  %v1144_v29 = vadd.f32 %v1142_v48, %v1058_v8 }
 0x3f3   : > { %v1278_v28 = vmul.f32 %v1277_v19, %v1265_v4  ;;  %v1279_v10 = vmul.f32 %v1277_v19, %v1266_v50  ;;  %v1145_v59 = vadd.f32 %v1143_v54, %v1059_v11 }
 0x3f4   : > { %v1314_v2 = vmul.f32 0.5, %v1313_v25 }
 0x3f5   : > { %v1280_v24 = vmul.f32 %v1278_v28, %v1237_v32  ;;  %v1281_v26 = vmul.f32 %v1279_v10, %v1238_v36 }
 0x3f6   : > { %v1315_v39 = vsub.f32 1.5, %v1314_v2 }
 0x3f7   : > { %v1282_v14 = vadd.f32 %v1280_v24, %v1239_v27  ;;  %v1283_v15 = vadd.f32 %v1281_v26, %v1240_v40 }
 0x3f8   : > { %v1316_v21 = vmul.f32 %v1452_v42, %v1315_v39 }
 0x3f9   : > { %v1327_v1 = vadd.f32 %v1282_v14, %v1101_v35  ;;  %v1328_v0 = vadd.f32 %v1283_v15, %v1102_v41 }
 0x3fa   : > { %v1320_v44 = vsel %vm1319_vm11, %v1452_v42, %v1316_v21 }
 0x3fb   : > { %v1331_v52 = vmax.f32 %v1327_v1, 0.0  ;;  %v1332_v55 = vmax.f32 %v1328_v0, 0.0  ;;  %v1321_v47 = vmul.f32 %v1320_v44, %v1308_v45  ;;  %v1322_v30 = vmul.f32 %v1320_v44, %v1309_v31 }
 0x3fd   : > { %1335 = vst [vmem:[%s469_s28] sm:$0xff] %v1331_v52  ;;  %v1323_v7 = vmul.f32 %v1321_v47, %v1237_v32  ;;  %v1324_v17 = vmul.f32 %v1322_v30, %v1238_v36 }
 0x3fe   : > { %1336 = vst [vmem:[%s469_s28 + $0x8] sm:$0xff] %v1332_v55 }
 0x3ff   : > { %v1325_v38 = vadd.f32 %v1323_v7, %v1239_v27  ;;  %v1326_v49 = vadd.f32 %v1324_v17, %v1240_v40 }
 0x401   : > { %v1329_v23 = vadd.f32 %v1325_v38, %v1144_v29  ;;  %v1330_v6 = vadd.f32 %v1326_v49, %v1145_v59 }
 0x403   : > { %v1333_v20 = vmax.f32 %v1329_v23, 0.0  ;;  %v1334_v56 = vmax.f32 %v1330_v6, 0.0 }
 0x405   : > { %1337 = vst [vmem:[%s469_s28 + $0x10] sm:$0xff] %v1333_v20 }
 0x406   : > { %1338 = vst [vmem:[%s469_s28 + $0x18] sm:$0xff] %v1334_v56 }
 0x407 PF: > { %s24_s29 = sadd.s32 1, %s1460_s29  }
 0x408   : > { %p21_p4 = scmp.ge.s32.totalorder %s24_s29, 4  }
 0x40a   :  { %23 = sbr.rel (!%p21_p4) target bundleno = 1 (0x1), region = 106 }

</bundles_post_ra>
